<compile_context>
chip_gen: v7x
topology: tpu7x:2x2x1
jax: 0.10.0
libtpu: 0.0.40
codegen_flags: <defaults>
</compile_context>

<pallas_src>
import jax
import jax.numpy as jnp
from jax import lax
from jax.experimental import pallas as pl
from jax.experimental.pallas import tpu as pltpu


_GELU_C = 0.7978845608028654  # sqrt(2/pi)


def _tpu_vmem_capacity_bytes():
    try:
        return int(pltpu.get_tpu_info().vmem_capacity_bytes)
    except Exception:
        return 64 << 20  # conservative (v7x-sized) fallback


_VMEM_CAP = _tpu_vmem_capacity_bytes()
# Explicit scoped-VMEM limit for the matmul kernels (v5e default is ~16 MiB).
_VMEM_LIMIT = int(min(_VMEM_CAP * 3 // 4, 96 << 20))
# Row (M) tile: 1024 on 128 MiB-VMEM chips (v5e/v6e), 512 on v7x (64 MiB).
_ROW_TILE = 1024 if _VMEM_CAP >= (100 << 20) else 512
# Maximum N / K tile of the (D, D) weight.
_COL_TILE = 1024


def _round_up(x, m):
    return (x + m - 1) // m * m


def _stream_row_tile(R):
    """(row tile, padded row count) for an activation stream with R rows."""
    r8 = _round_up(R, 8)
    if r8 <= _ROW_TILE:
        return r8, r8
    return _ROW_TILE, _round_up(R, _ROW_TILE)


def _row_tile_that_divides(R, cap):
    """Largest multiple of 8 <= cap that divides R (R is a multiple of 8)."""
    cap = max(8, min(cap, R))
    t = (cap // 8) * 8
    while t > 8 and R % t:
        t -= 8
    return t


def _col_tile(D):
    """Largest tile <= _COL_TILE that divides D (128-aligned when possible)."""
    if D <= _COL_TILE:
        return D
    step = 128 if D % 128 == 0 else 8
    t = (_COL_TILE // step) * step
    while t >= step:
        if D % t == 0:
            return t
        t -= step
    return D


def _pad_rows(x2d, rows_padded):
    R = x2d.shape[0]
    if R == rows_padded:
        return x2d
    return jnp.pad(x2d, ((0, rows_padded - R), (0, 0)))


def _gelu_tanh(y):
    return 0.5 * y * (1.0 + jnp.tanh(_GELU_C * (y + 0.044715 * y * y * y)))


# ------------------------------ Pallas kernels ------------------------------

def _block_kernel(xb_ref, xr_ref, w_ref, o_ref, ob_ref, acc_ref):
    """out = xr + gelu_tanh(xb @ W); bf16 LHS, f32 accumulator, bf16 twin out."""
    k = pl.program_id(2)

    @pl.when(k == 0)
    def _():
        acc_ref[...] = jnp.zeros_like(acc_ref)

    acc_ref[...] += jnp.dot(xb_ref[...], w_ref[...],
                            preferred_element_type=jnp.float32)

    @pl.when(k == pl.num_programs(2) - 1)
    def _():
        out = xr_ref[...] + _gelu_tanh(acc_ref[...])
        o_ref[...] = out.astype(o_ref.dtype)
        ob_ref[...] = out.astype(jnp.bfloat16)


def _block_res_kernel(xb_ref, xr_ref, orig_ref, w_ref, o_ref, res_ref, acc_ref):
    """Last block of the chain: also emits res = out - orig in the epilogue."""
    k = pl.program_id(2)

    @pl.when(k == 0)
    def _():
        acc_ref[...] = jnp.zeros_like(acc_ref)

    acc_ref[...] += jnp.dot(xb_ref[...], w_ref[...],
                            preferred_element_type=jnp.float32)

    @pl.when(k == pl.num_programs(2) - 1)
    def _():
        out = xr_ref[...] + _gelu_tanh(acc_ref[...])
        o_ref[...] = out.astype(o_ref.dtype)
        res_ref[...] = (out - orig_ref[...]).astype(res_ref.dtype)


def _first_block_kernel(xb_ref, xr_ref, prev_ref, w_ref,
                        o_ref, ob_ref, fres_ref, sdiff_ref, sabs_ref, acc_ref):
    """Fused block 0: out = xr + gelu(xb@W), first residual (bf16), plus the
    relative-L1 partial sums |prev - g| and |prev| per M row tile (so the M
    grid axis can stay "parallel" across TensorCores)."""
    j = pl.program_id(1)
    k = pl.program_id(2)

    @pl.when((j == 0) & (k == 0))
    def _():
        sdiff_ref[...] = jnp.zeros_like(sdiff_ref)
        sabs_ref[...] = jnp.zeros_like(sabs_ref)

    @pl.when(k == 0)
    def _():
        acc_ref[...] = jnp.zeros_like(acc_ref)

    acc_ref[...] += jnp.dot(xb_ref[...], w_ref[...],
                            preferred_element_type=jnp.float32)

    @pl.when(k == pl.num_programs(2) - 1)
    def _():
        g = _gelu_tanh(acc_ref[...])
        out = xr_ref[...] + g
        o_ref[...] = out.astype(o_ref.dtype)
        ob_ref[...] = out.astype(jnp.bfloat16)
        fres_ref[...] = g.astype(jnp.bfloat16)
        prev = prev_ref[...].astype(jnp.float32)
        # one cross-lane reduce per (M, N) output tile; the per-M-tile partial
        # blocks stay resident in VMEM across the (j, k) "arbitrary" axes.
        sdiff_ref[...] += jnp.sum(jnp.abs(prev - g))
        sabs_ref[...] += jnp.sum(jnp.abs(prev))


def _add_kernel(a_ref, b_ref, o_ref):
    o_ref[...] = a_ref[...] + b_ref[...]


# ----------------------------- Pallas wrappers ------------------------------

def block_apply(xb, xr, w_bf16, tm):
    """One block.  xb: (R,D) bf16 MXU LHS; xr: (R,D) f32 residual base.
    Returns (out_f32, out_bf16); the bf16 twin feeds the next block's LHS."""
    R, D = xr.shape
    tn = tk = _col_tile(D)
    return pl.pallas_call(
        _block_kernel,
        out_shape=(jax.ShapeDtypeStruct((R, D), jnp.float32),
                   jax.ShapeDtypeStruct((R, D), jnp.bfloat16)),
        grid=(R // tm, D // tn, D // tk),
        in_specs=[
            pl.BlockSpec((tm, tk), lambda i, j, k: (i, k)),   # bf16 LHS
            pl.BlockSpec((tm, tn), lambda i, j, k: (i, j)),   # f32 residual base
            pl.BlockSpec((tk, tn), lambda i, j, k: (k, j)),   # bf16 weight
        ],
        out_specs=(pl.BlockSpec((tm, tn), lambda i, j, k: (i, j)),
                   pl.BlockSpec((tm, tn), lambda i, j, k: (i, j))),
        scratch_shapes=[pltpu.VMEM((tm, tn), jnp.float32)],
        compiler_params=pltpu.CompilerParams(
            dimension_semantics=("parallel", "parallel", "arbitrary"),
            vmem_limit_bytes=_VMEM_LIMIT),
    )(xb, xr, w_bf16)


def block_apply_res(xb, xr, orig, w_bf16, tm):
    """Last block of a chain: returns (out_f32, out - orig) fused in epilogue."""
    R, D = xr.shape
    tn = tk = _col_tile(D)
    return pl.pallas_call(
        _block_res_kernel,
        out_shape=(jax.ShapeDtypeStruct((R, D), jnp.float32),
                   jax.ShapeDtypeStruct((R, D), jnp.float32)),
        grid=(R // tm, D // tn, D // tk),
        in_specs=[
            pl.BlockSpec((tm, tk), lambda i, j, k: (i, k)),
            pl.BlockSpec((tm, tn), lambda i, j, k: (i, j)),
            pl.BlockSpec((tm, tn), lambda i, j, k: (i, j)),   # block-0 output
            pl.BlockSpec((tk, tn), lambda i, j, k: (k, j)),
        ],
        out_specs=(pl.BlockSpec((tm, tn), lambda i, j, k: (i, j)),
                   pl.BlockSpec((tm, tn), lambda i, j, k: (i, j))),
        scratch_shapes=[pltpu.VMEM((tm, tn), jnp.float32)],
        compiler_params=pltpu.CompilerParams(
            dimension_semantics=("parallel", "parallel", "arbitrary"),
            vmem_limit_bytes=_VMEM_LIMIT),
    )(xb, xr, orig, w_bf16)


def first_block_apply(xb, xr, prev_bf16, w_bf16, tm):
    """Fused block 0 on hidden_states.  Returns (out_f32, out_bf16,
    first_residual_bf16, sdiff_partials, sabs_partials)."""
    R, D = xr.shape
    tn = tk = _col_tile(D)
    nm = R // tm
    return pl.pallas_call(
        _first_block_kernel,
        out_shape=(jax.ShapeDtypeStruct((R, D), jnp.float32),
                   jax.ShapeDtypeStruct((R, D), jnp.bfloat16),
                   jax.ShapeDtypeStruct((R, D), jnp.bfloat16),
                   jax.ShapeDtypeStruct((nm, 8, 128), jnp.float32),
                   jax.ShapeDtypeStruct((nm, 8, 128), jnp.float32)),
        grid=(nm, D // tn, D // tk),
        in_specs=[
            pl.BlockSpec((tm, tk), lambda i, j, k: (i, k)),
            pl.BlockSpec((tm, tn), lambda i, j, k: (i, j)),
            pl.BlockSpec((tm, tn), lambda i, j, k: (i, j)),   # prev residual bf16
            pl.BlockSpec((tk, tn), lambda i, j, k: (k, j)),
        ],
        out_specs=(pl.BlockSpec((tm, tn), lambda i, j, k: (i, j)),
                   pl.BlockSpec((tm, tn), lambda i, j, k: (i, j)),
                   pl.BlockSpec((tm, tn), lambda i, j, k: (i, j)),
                   pl.BlockSpec((1, 8, 128), lambda i, j, k: (i, 0, 0)),
                   pl.BlockSpec((1, 8, 128), lambda i, j, k: (i, 0, 0))),
        scratch_shapes=[pltpu.VMEM((tm, tn), jnp.float32)],
        # M parallel (megacore on v7x); N/K are reduction-ish for the partials.
        compiler_params=pltpu.CompilerParams(
            dimension_semantics=("parallel", "arbitrary", "arbitrary"),
            vmem_limit_bytes=_VMEM_LIMIT),
    )(xb, xr, prev_bf16, w_bf16)


def padded_add(a, b):
    """Lane-dense elementwise add on already-padded (R, D) f32 arrays."""
    R, D = a.shape
    cap = max(8, ((2 << 20) // max(D * 4, 1)) // 8 * 8)
    tm = _row_tile_that_divides(R, cap)
    return pl.pallas_call(
        _add_kernel,
        out_shape=jax.ShapeDtypeStruct((R, D), a.dtype),
        grid=(R // tm,),
        in_specs=[pl.BlockSpec((tm, D), lambda i: (i, 0))] * 2,
        out_specs=pl.BlockSpec((tm, D), lambda i: (i, 0)),
        compiler_params=pltpu.CompilerParams(dimension_semantics=("parallel",)),
    )(a, b)


# ------------------------ CachedTransformerBlocks port ----------------------

class FBCachedTransformerBlocksPallas:
    """Functional port of CachedTransformerBlocks (FBCache concrete subclass:
    get_start_idx() == 1, similarity == relative-L1 < threshold).

    Each synthetic transformer block is  out = x + gelu_tanh(x @ W)  with one
    (D, D) weight for hidden_states and one for encoder_hidden_states; the
    single_transformer_blocks take one (D, D) weight and act on the
    concatenated [encoder, hidden] sequence.  Block 0 always runs, its
    residual is compared (relative L1) against the previous step's residual,
    and either the cached residuals are re-applied or the remaining blocks
    run; the compare-and-branch is a device-side lax.cond (no host sync)."""

    def __init__(self, hidden_block_weights, encoder_block_weights,
                 single_block_weights=None, rel_l1_thresh=0.6,
                 return_hidden_states_first=True):
        assert len(hidden_block_weights) == len(encoder_block_weights)
        # Weights stored bf16 for the MXU; accumulation / GELU stay in f32.
        self.wh = [jnp.asarray(w, jnp.bfloat16) for w in hidden_block_weights]
        self.we = [jnp.asarray(w, jnp.bfloat16) for w in encoder_block_weights]
        self.ws = (None if single_block_weights is None
                   else [jnp.asarray(w, jnp.bfloat16) for w in single_block_weights])
        self.rel_l1_thresh = float(rel_l1_thresh)
        self.return_hidden_states_first = return_hidden_states_first
        self.use_cache = False      # device bool after step >= 2 (no host sync)
        self.rel_l1 = None          # device scalar after step >= 2
        self.buffers = {}           # CacheContext.buffers equivalent
        self._step_fn = None

    # --- cache-context equivalents ---
    def get_buffer(self, name):
        return self.buffers.get(name)

    def set_buffer(self, name, buf):
        self.buffers[name] = buf

    def get_start_idx(self):
        return 1  # FBCache: block 0 already run inside get_modulated_inputs

    # --- jitted step (built lazily; weights closed over) ---
    def _build_step_fn(self):
        thresh = jnp.float32(self.rel_l1_thresh)
        hidden_first = self.return_hidden_states_first
        wh, we, ws = self.wh, self.we, self.ws
        start_idx = self.get_start_idx()

        @jax.jit
        def step(hidden, encoder, prev_first_res, hs_res_buf, ehs_res_buf):
            B, S, D = hidden.shape
            _, S_e, _ = encoder.shape
            R_h, R_e = B * S, B * S_e
            tm_h, Rp_h = _stream_row_tile(R_h)
            tm_e, Rp_e = _stream_row_tile(R_e)

            # pad + bf16-cast ONCE per step (not per block call)
            hp = _pad_rows(hidden.reshape(R_h, D), Rp_h)
            ep = _pad_rows(encoder.reshape(R_e, D), Rp_e)
            hpb = hp.astype(jnp.bfloat16)
            epb = ep.astype(jnp.bfloat16)

            # block 0: fused with first residual + rel-L1 partial sums
            h1, h1b, first_res, sdiff_p, sabs_p = first_block_apply(
                hpb, hp, prev_first_res, wh[0], tm_h)
            e1, e1b = block_apply(epb, ep, we[0], tm_e)

            sdiff = jnp.sum(sdiff_p[:, 0, 0])
            sabs = jnp.sum(sabs_p[:, 0, 0])
            rel = sdiff / jnp.maximum(sabs, jnp.float32(1e-20))
            # use_cache is False when the denominator vanishes (matches the
            # inf/NaN < threshold == False behaviour of the reference); on the
            # very first step prev == 0 so this is automatically False.
            use_cache = jnp.logical_and(sabs > 0.0, sdiff < thresh * sabs)

            def cached_branch(_):
                out_h = padded_add(hp, hs_res_buf)
                out_e = padded_add(ep, ehs_res_buf)
                return out_h, out_e, hs_res_buf, ehs_res_buf

            def full_branch(_):
                pairs = list(zip(wh[start_idx:], we[start_idx:]))
                h, hb, e, eb = h1, h1b, e1, e1b
                if not hidden_first:
                    # literal reference semantics (per-pair output swap); the
                    # residual fusion is skipped in this non-default config.
                    for whi, wei in pairs:
                        nh, nhb = block_apply(hb, h, whi, tm_h)
                        ne, neb = block_apply(eb, e, wei, tm_e)
                        h, hb, e, eb = ne, neb, nh, nhb
                    if ws:
                        cat = jnp.concatenate([e, h], axis=0)
                        catb = jnp.concatenate([eb, hb], axis=0)
                        tm_c = _row_tile_that_divides(cat.shape[0], _ROW_TILE)
                        for w in ws:
                            cat, catb = block_apply(catb, cat, w, tm_c)
                        e, h = cat[:e.shape[0]], cat[e.shape[0]:]
                    return h, e, h - h1, e - e1
                if ws:
                    for whi, wei in pairs:
                        h, hb = block_apply(hb, h, whi, tm_h)
                        e, eb = block_apply(eb, e, wei, tm_e)
                    # row-concatenated [encoder, hidden] stream for the
                    # single blocks (padded rows are zero and pass through).
                    cat = jnp.concatenate([e, h], axis=0)
                    catb = jnp.concatenate([eb, hb], axis=0)
                    cat1 = jnp.concatenate([e1, h1], axis=0)
                    tm_c = _row_tile_that_divides(Rp_e + Rp_h, _ROW_TILE)
                    for w in ws[:-1]:
                        cat, catb = block_apply(catb, cat, w, tm_c)
                    cat, cat_res = block_apply_res(catb, cat, cat1, ws[-1], tm_c)
                    e, h = cat[:Rp_e], cat[Rp_e:]
                    ehs_res, hs_res = cat_res[:Rp_e], cat_res[Rp_e:]
                elif pairs:
                    for whi, wei in pairs[:-1]:
                        h, hb = block_apply(hb, h, whi, tm_h)
                        e, eb = block_apply(eb, e, wei, tm_e)
                    whl, wel = pairs[-1]
                    h, hs_res = block_apply_res(hb, h, h1, whl, tm_h)
                    e, ehs_res = block_apply_res(eb, e, e1, wel, tm_e)
                else:
                    hs_res = jnp.zeros_like(h1)
                    ehs_res = jnp.zeros_like(e1)
                return h, e, hs_res, ehs_res

            out_h_p, out_e_p, hs_res, ehs_res = lax.cond(
                use_cache, cached_branch, full_branch, None)

            # un-pad once per step
            out_h = out_h_p[:R_h].reshape(B, S, D)
            out_e = out_e_p[:R_e].reshape(B, S_e, D)
            return (out_h, out_e, h1, e1, first_res, hs_res, ehs_res,
                    use_cache, rel)

        return step

    # --- forward, mirroring CachedTransformerBlocks.forward ---
    def forward(self, hidden_states, encoder_hidden_states):
        if self._step_fn is None:
            self._step_fn = self._build_step_fn()

        B, S, D = hidden_states.shape
        _, S_e, _ = encoder_hidden_states.shape
        _, Rp_h = _stream_row_tile(B * S)
        _, Rp_e = _stream_row_tile(B * S_e)

        prev = self.get_buffer("first_hidden_states_residual")
        first_call = prev is None
        if first_call:
            # zero prev -> sabs == 0 -> use_cache False (full compute path)
            prev = jnp.zeros((Rp_h, D), jnp.bfloat16)
            hs_res_buf = jnp.zeros((Rp_h, D), jnp.float32)
            ehs_res_buf = jnp.zeros((Rp_e, D), jnp.float32)
        else:
            hs_res_buf = self.get_buffer("hidden_states_residual")
            ehs_res_buf = self.get_buffer("encoder_hidden_states_residual")

        (out_h, out_e, h1, e1, first_res, hs_res, ehs_res,
         use_cache, rel) = self._step_fn(
            hidden_states, encoder_hidden_states, prev, hs_res_buf, ehs_res_buf)

        # buffers kept in padded 2-D form (internal cache-context equivalents)
        self.set_buffer("first_hidden_states_residual", first_res)   # bf16
        self.set_buffer("original_hidden_states", h1)
        self.set_buffer("original_encoder_hidden_states", e1)
        self.set_buffer("hidden_states_residual", hs_res)
        self.set_buffer("encoder_hidden_states_residual", ehs_res)

        if first_call:
            self.use_cache = False
            self.rel_l1 = None
        else:
            # kept as device scalars: no host sync on the decision path
            self.use_cache = use_cache
            self.rel_l1 = rel

        return ((out_h, out_e) if self.return_hidden_states_first
                else (out_e, out_h))


# ----------------------------------- main -----------------------------------

if __name__ == "__main__":
    key = jax.random.PRNGKey(0)
    B, S, S_enc, D = 2, 16, 8, 32
    num_blocks, num_single = 3, 2
    keys = jax.random.split(key, 3 + 2 * num_blocks + num_single)

    hidden_states = jax.random.normal(keys[0], (B, S, D), jnp.float32)
    encoder_hidden_states = jax.random.normal(keys[1], (B, S_enc, D), jnp.float32)

    scale = 0.05
    wh = [scale * jax.random.normal(keys[3 + i], (D, D), jnp.float32)
          for i in range(num_blocks)]
    we = [scale * jax.random.normal(keys[3 + num_blocks + i], (D, D), jnp.float32)
          for i in range(num_blocks)]
    ws = [scale * jax.random.normal(keys[3 + 2 * num_blocks + i], (D, D), jnp.float32)
          for i in range(num_single)]

    model = FBCachedTransformerBlocksPallas(wh, we, single_block_weights=ws,
                                            rel_l1_thresh=0.6,
                                            return_hidden_states_first=True)

    # Step 1: no previous cache -> full (non-cached) compute path.
    out_h1, out_e1 = model.forward(hidden_states, encoder_hidden_states)
    jax.block_until_ready((out_h1, out_e1))

    # Reference of the non-cached path with the same bf16 weights / bf16 MXU
    # LHS (f32 accumulation + f32 GELU), matching the kernel's precision.
    def ref_block(x, w_bf16):
        x2 = x.reshape(-1, x.shape[-1])
        y = jnp.dot(x2.astype(jnp.bfloat16), w_bf16,
                    preferred_element_type=jnp.float32)
        return x + _gelu_tanh(y).reshape(x.shape)

    rh, re = hidden_states, encoder_hidden_states
    for whi, wei in zip(model.wh, model.we):
        rh, re = ref_block(rh, whi), ref_block(re, wei)
    cat = jnp.concatenate([re, rh], axis=1)
    for w in model.ws:
        cat = ref_block(cat, w)
    re, rh = cat[:, :S_enc], cat[:, S_enc:]
    assert jnp.allclose(out_h1, rh, rtol=5e-3, atol=5e-3)
    assert jnp.allclose(out_e1, re, rtol=5e-3, atol=5e-3)

    # Keep the step-1 residual around to validate the cached branch.
    hs_res_step1 = model.get_buffer("hidden_states_residual")  # padded 2-D

    # Step 2: slightly perturbed input -> exercises the fused block-0 +
    # similarity kernel and the on-device lax.cond cached/full branch.
    hidden_states_2 = hidden_states + 1e-3 * jax.random.normal(
        keys[2], hidden_states.shape, jnp.float32)
    out_h2, out_e2 = model.forward(hidden_states_2, encoder_hidden_states)
    jax.block_until_ready((out_h2, out_e2))

    # Host-side inspection only (after the device-side decision already ran).
    if bool(model.use_cache):
        expect = hidden_states_2 + hs_res_step1[:B * S].reshape(B, S, D)
        assert jnp.allclose(out_h2, expect, rtol=1e-5, atol=1e-5)

    print("KERNEL_OK")
</pallas_src>

<mosaic_0001>
module attributes {stable_mosaic.version = 11 : i64} {
  func.func @_block_kernel(%arg0: i32, %arg1: i32, %arg2: i32, %arg3: memref<16x32xbf16, #tpu.memory_space<vmem>>, %arg4: memref<16x32xf32, #tpu.memory_space<vmem>>, %arg5: memref<32x32xbf16, #tpu.memory_space<vmem>>, %arg6: memref<16x32xf32, #tpu.memory_space<vmem>>, %arg7: memref<16x32xbf16, #tpu.memory_space<vmem>>, %arg8: memref<16x32xf32, #tpu.memory_space<vmem>>) attributes {dimension_semantics = [#tpu.dimension_semantics<parallel>, #tpu.dimension_semantics<parallel>, #tpu.dimension_semantics<arbitrary>], iteration_bounds = array<i64: 1, 1, 1>, scalar_prefetch = 0 : i64, scratch_operands = 1 : i64, tpu.core_type = #tpu.core_type<tc>, window_params = [{transform_indices = @transform_0, window_bounds = array<i64: 16, 32>}, {transform_indices = @transform_1, window_bounds = array<i64: 16, 32>}, {transform_indices = @transform_2, window_bounds = array<i64: 32, 32>}, {transform_indices = @transform_3, window_bounds = array<i64: 16, 32>}, {transform_indices = @transform_4, window_bounds = array<i64: 16, 32>}]} {
    %c0_i32 = arith.constant 0 : i32
    %0 = arith.cmpi eq, %arg2, %c0_i32 : i32
    %1 = arith.extui %0 : i1 to i32
    %c0_i32_0 = arith.constant 0 : i32
    %2 = arith.cmpi ne, %1, %c0_i32_0 : i32
    scf.if %2 {
      %cst_10 = arith.constant 0.000000e+00 : f32
      %12 = vector.broadcast %cst_10 : f32 to vector<16x32xf32>
      %c0_11 = arith.constant 0 : index
      %c0_12 = arith.constant 0 : index
      %13 = vector.load %arg8[%c0_11, %c0_12] : memref<16x32xf32, #tpu.memory_space<vmem>>, vector<16x32xf32>
      tpu.vector_store %arg8[%c0_11, %c0_12], %12 {strides = array<i32>} : memref<16x32xf32, #tpu.memory_space<vmem>>, vector<16x32xf32>,
    } else {
    }
    %c0 = arith.constant 0 : index
    %c0_1 = arith.constant 0 : index
    %3 = vector.load %arg8[%c0, %c0_1] : memref<16x32xf32, #tpu.memory_space<vmem>>, vector<16x32xf32>
    %c0_2 = arith.constant 0 : index
    %c0_3 = arith.constant 0 : index
    %4 = vector.load %arg3[%c0_2, %c0_3] : memref<16x32xbf16, #tpu.memory_space<vmem>>, vector<16x32xbf16>
    %c0_4 = arith.constant 0 : index
    %c0_5 = arith.constant 0 : index
    %5 = vector.load %arg5[%c0_4, %c0_5] : memref<32x32xbf16, #tpu.memory_space<vmem>>, vector<32x32xbf16>
    %cst = arith.constant dense<0.000000e+00> : vector<16x32xf32>
    %6 = tpu.matmul %4, %5, %cst {dimension_numbers = #tpu.dot_dimension_numbers<[1], [0], [0], [1], [0, 0, 1, 1], [], []>} : vector<16x32xbf16>, vector<32x32xbf16>, vector<16x32xf32> -> vector<16x32xf32>
    %7 = arith.addf %3, %6 : vector<16x32xf32>
    %c0_6 = arith.constant 0 : index
    %c0_7 = arith.constant 0 : index
    %8 = vector.load %arg8[%c0_6, %c0_7] : memref<16x32xf32, #tpu.memory_space<vmem>>, vector<16x32xf32>
    tpu.vector_store %arg8[%c0_6, %c0_7], %7 {strides = array<i32>} : memref<16x32xf32, #tpu.memory_space<vmem>>, vector<16x32xf32>,
    %c0_i32_8 = arith.constant 0 : i32
    %9 = arith.cmpi eq, %arg2, %c0_i32_8 : i32
    %10 = arith.extui %9 : i1 to i32
    %c0_i32_9 = arith.constant 0 : i32
    %11 = arith.cmpi ne, %10, %c0_i32_9 : i32
    scf.if %11 {
      %c0_10 = arith.constant 0 : index
      %c0_11 = arith.constant 0 : index
      %12 = vector.load %arg4[%c0_10, %c0_11] : memref<16x32xf32, #tpu.memory_space<vmem>>, vector<16x32xf32>
      %c0_12 = arith.constant 0 : index
      %c0_13 = arith.constant 0 : index
      %13 = vector.load %arg8[%c0_12, %c0_13] : memref<16x32xf32, #tpu.memory_space<vmem>>, vector<16x32xf32>
      %cst_14 = arith.constant 5.000000e-01 : f32
      %14 = vector.broadcast %cst_14 : f32 to vector<16x32xf32>
      %15 = arith.mulf %14, %13 : vector<16x32xf32>
      %cst_15 = arith.constant 4.471500e-02 : f32
      %16 = vector.broadcast %cst_15 : f32 to vector<16x32xf32>
      %17 = arith.mulf %16, %13 : vector<16x32xf32>
      %18 = arith.mulf %17, %13 : vector<16x32xf32>
      %19 = arith.mulf %18, %13 : vector<16x32xf32>
      %20 = arith.addf %13, %19 : vector<16x32xf32>
      %cst_16 = arith.constant 0.797884583 : f32
      %21 = vector.broadcast %cst_16 : f32 to vector<16x32xf32>
      %22 = arith.mulf %21, %20 : vector<16x32xf32>
      %23 = math.tanh %22 : vector<16x32xf32>
      %cst_17 = arith.constant 1.000000e+00 : f32
      %24 = vector.broadcast %cst_17 : f32 to vector<16x32xf32>
      %25 = arith.addf %24, %23 : vector<16x32xf32>
      %26 = arith.mulf %15, %25 : vector<16x32xf32>
      %27 = arith.addf %12, %26 : vector<16x32xf32>
      %c0_18 = arith.constant 0 : index
      %c0_19 = arith.constant 0 : index
      %28 = vector.load %arg6[%c0_18, %c0_19] : memref<16x32xf32, #tpu.memory_space<vmem>>, vector<16x32xf32>
      tpu.vector_store %arg6[%c0_18, %c0_19], %27 {strides = array<i32>} : memref<16x32xf32, #tpu.memory_space<vmem>>, vector<16x32xf32>,
      %29 = arith.truncf %27 : vector<16x32xf32> to vector<16x32xbf16>
      %c0_20 = arith.constant 0 : index
      %c0_21 = arith.constant 0 : index
      %30 = vector.load %arg7[%c0_20, %c0_21] : memref<16x32xbf16, #tpu.memory_space<vmem>>, vector<16x32xbf16>
      tpu.vector_store %arg7[%c0_20, %c0_21], %29 {strides = array<i32>} : memref<16x32xbf16, #tpu.memory_space<vmem>>, vector<16x32xbf16>,
    } else {
    }
    return
  }
  func.func @transform_0(%arg0: i32, %arg1: i32, %arg2: i32) -> (i32, i32) {
    %c0_i32 = arith.constant 0 : i32
    return %arg0, %arg2 : i32, i32
  }
  func.func @transform_1(%arg0: i32, %arg1: i32, %arg2: i32) -> (i32, i32) {
    %c0_i32 = arith.constant 0 : i32
    return %arg0, %arg1 : i32, i32
  }
  func.func @transform_2(%arg0: i32, %arg1: i32, %arg2: i32) -> (i32, i32) {
    %c0_i32 = arith.constant 0 : i32
    return %arg2, %arg1 : i32, i32
  }
  func.func @transform_3(%arg0: i32, %arg1: i32, %arg2: i32) -> (i32, i32) {
    %c0_i32 = arith.constant 0 : i32
    return %arg0, %arg1 : i32, i32
  }
  func.func @transform_4(%arg0: i32, %arg1: i32, %arg2: i32) -> (i32, i32) {
    %c0_i32 = arith.constant 0 : i32
    return %arg0, %arg1 : i32, i32
  }
}

module attributes {stable_mosaic.version = 11 : i64} {
  func.func @_block_kernel(%arg0: i32, %arg1: i32, %arg2: i32, %arg3: memref<32x32xbf16, #tpu.memory_space<vmem>>, %arg4: memref<32x32xf32, #tpu.memory_space<vmem>>, %arg5: memref<32x32xbf16, #tpu.memory_space<vmem>>, %arg6: memref<32x32xf32, #tpu.memory_space<vmem>>, %arg7: memref<32x32xbf16, #tpu.memory_space<vmem>>, %arg8: memref<32x32xf32, #tpu.memory_space<vmem>>) attributes {dimension_semantics = [#tpu.dimension_semantics<parallel>, #tpu.dimension_semantics<parallel>, #tpu.dimension_semantics<arbitrary>], iteration_bounds = array<i64: 1, 1, 1>, scalar_prefetch = 0 : i64, scratch_operands = 1 : i64, tpu.core_type = #tpu.core_type<tc>, window_params = [{transform_indices = @transform_0, window_bounds = array<i64: 32, 32>}, {transform_indices = @transform_1, window_bounds = array<i64: 32, 32>}, {transform_indices = @transform_2, window_bounds = array<i64: 32, 32>}, {transform_indices = @transform_3, window_bounds = array<i64: 32, 32>}, {transform_indices = @transform_4, window_bounds = array<i64: 32, 32>}]} {
    %c0_i32 = arith.constant 0 : i32
    %0 = arith.cmpi eq, %arg2, %c0_i32 : i32
    %1 = arith.extui %0 : i1 to i32
    %c0_i32_0 = arith.constant 0 : i32
    %2 = arith.cmpi ne, %1, %c0_i32_0 : i32
    scf.if %2 {
      %cst_10 = arith.constant 0.000000e+00 : f32
      %12 = vector.broadcast %cst_10 : f32 to vector<32x32xf32>
      %c0_11 = arith.constant 0 : index
      %c0_12 = arith.constant 0 : index
      %13 = vector.load %arg8[%c0_11, %c0_12] : memref<32x32xf32, #tpu.memory_space<vmem>>, vector<32x32xf32>
      tpu.vector_store %arg8[%c0_11, %c0_12], %12 {strides = array<i32>} : memref<32x32xf32, #tpu.memory_space<vmem>>, vector<32x32xf32>,
    } else {
    }
    %c0 = arith.constant 0 : index
    %c0_1 = arith.constant 0 : index
    %3 = vector.load %arg8[%c0, %c0_1] : memref<32x32xf32, #tpu.memory_space<vmem>>, vector<32x32xf32>
    %c0_2 = arith.constant 0 : index
    %c0_3 = arith.constant 0 : index
    %4 = vector.load %arg3[%c0_2, %c0_3] : memref<32x32xbf16, #tpu.memory_space<vmem>>, vector<32x32xbf16>
    %c0_4 = arith.constant 0 : index
    %c0_5 = arith.constant 0 : index
    %5 = vector.load %arg5[%c0_4, %c0_5] : memref<32x32xbf16, #tpu.memory_space<vmem>>, vector<32x32xbf16>
    %cst = arith.constant dense<0.000000e+00> : vector<32x32xf32>
    %6 = tpu.matmul %4, %5, %cst {dimension_numbers = #tpu.dot_dimension_numbers<[1], [0], [0], [1], [0, 0, 1, 1], [], []>} : vector<32x32xbf16>, vector<32x32xbf16>, vector<32x32xf32> -> vector<32x32xf32>
    %7 = arith.addf %3, %6 : vector<32x32xf32>
    %c0_6 = arith.constant 0 : index
    %c0_7 = arith.constant 0 : index
    %8 = vector.load %arg8[%c0_6, %c0_7] : memref<32x32xf32, #tpu.memory_space<vmem>>, vector<32x32xf32>
    tpu.vector_store %arg8[%c0_6, %c0_7], %7 {strides = array<i32>} : memref<32x32xf32, #tpu.memory_space<vmem>>, vector<32x32xf32>,
    %c0_i32_8 = arith.constant 0 : i32
    %9 = arith.cmpi eq, %arg2, %c0_i32_8 : i32
    %10 = arith.extui %9 : i1 to i32
    %c0_i32_9 = arith.constant 0 : i32
    %11 = arith.cmpi ne, %10, %c0_i32_9 : i32
    scf.if %11 {
      %c0_10 = arith.constant 0 : index
      %c0_11 = arith.constant 0 : index
      %12 = vector.load %arg4[%c0_10, %c0_11] : memref<32x32xf32, #tpu.memory_space<vmem>>, vector<32x32xf32>
      %c0_12 = arith.constant 0 : index
      %c0_13 = arith.constant 0 : index
      %13 = vector.load %arg8[%c0_12, %c0_13] : memref<32x32xf32, #tpu.memory_space<vmem>>, vector<32x32xf32>
      %cst_14 = arith.constant 5.000000e-01 : f32
      %14 = vector.broadcast %cst_14 : f32 to vector<32x32xf32>
      %15 = arith.mulf %14, %13 : vector<32x32xf32>
      %cst_15 = arith.constant 4.471500e-02 : f32
      %16 = vector.broadcast %cst_15 : f32 to vector<32x32xf32>
      %17 = arith.mulf %16, %13 : vector<32x32xf32>
      %18 = arith.mulf %17, %13 : vector<32x32xf32>
      %19 = arith.mulf %18, %13 : vector<32x32xf32>
      %20 = arith.addf %13, %19 : vector<32x32xf32>
      %cst_16 = arith.constant 0.797884583 : f32
      %21 = vector.broadcast %cst_16 : f32 to vector<32x32xf32>
      %22 = arith.mulf %21, %20 : vector<32x32xf32>
      %23 = math.tanh %22 : vector<32x32xf32>
      %cst_17 = arith.constant 1.000000e+00 : f32
      %24 = vector.broadcast %cst_17 : f32 to vector<32x32xf32>
      %25 = arith.addf %24, %23 : vector<32x32xf32>
      %26 = arith.mulf %15, %25 : vector<32x32xf32>
      %27 = arith.addf %12, %26 : vector<32x32xf32>
      %c0_18 = arith.constant 0 : index
      %c0_19 = arith.constant 0 : index
      %28 = vector.load %arg6[%c0_18, %c0_19] : memref<32x32xf32, #tpu.memory_space<vmem>>, vector<32x32xf32>
      tpu.vector_store %arg6[%c0_18, %c0_19], %27 {strides = array<i32>} : memref<32x32xf32, #tpu.memory_space<vmem>>, vector<32x32xf32>,
      %29 = arith.truncf %27 : vector<32x32xf32> to vector<32x32xbf16>
      %c0_20 = arith.constant 0 : index
      %c0_21 = arith.constant 0 : index
      %30 = vector.load %arg7[%c0_20, %c0_21] : memref<32x32xbf16, #tpu.memory_space<vmem>>, vector<32x32xbf16>
      tpu.vector_store %arg7[%c0_20, %c0_21], %29 {strides = array<i32>} : memref<32x32xbf16, #tpu.memory_space<vmem>>, vector<32x32xbf16>,
    } else {
    }
    return
  }
  func.func @transform_0(%arg0: i32, %arg1: i32, %arg2: i32) -> (i32, i32) {
    %c0_i32 = arith.constant 0 : i32
    return %arg0, %arg2 : i32, i32
  }
  func.func @transform_1(%arg0: i32, %arg1: i32, %arg2: i32) -> (i32, i32) {
    %c0_i32 = arith.constant 0 : i32
    return %arg0, %arg1 : i32, i32
  }
  func.func @transform_2(%arg0: i32, %arg1: i32, %arg2: i32) -> (i32, i32) {
    %c0_i32 = arith.constant 0 : i32
    return %arg2, %arg1 : i32, i32
  }
  func.func @transform_3(%arg0: i32, %arg1: i32, %arg2: i32) -> (i32, i32) {
    %c0_i32 = arith.constant 0 : i32
    return %arg0, %arg1 : i32, i32
  }
  func.func @transform_4(%arg0: i32, %arg1: i32, %arg2: i32) -> (i32, i32) {
    %c0_i32 = arith.constant 0 : i32
    return %arg0, %arg1 : i32, i32
  }
}

module attributes {stable_mosaic.version = 11 : i64} {
  func.func @_first_block_kernel(%arg0: i32, %arg1: i32, %arg2: i32, %arg3: memref<32x32xbf16, #tpu.memory_space<vmem>>, %arg4: memref<32x32xf32, #tpu.memory_space<vmem>>, %arg5: memref<32x32xbf16, #tpu.memory_space<vmem>>, %arg6: memref<32x32xbf16, #tpu.memory_space<vmem>>, %arg7: memref<32x32xf32, #tpu.memory_space<vmem>>, %arg8: memref<32x32xbf16, #tpu.memory_space<vmem>>, %arg9: memref<32x32xbf16, #tpu.memory_space<vmem>>, %arg10: memref<1x8x128xf32, #tpu.memory_space<vmem>>, %arg11: memref<1x8x128xf32, #tpu.memory_space<vmem>>, %arg12: memref<32x32xf32, #tpu.memory_space<vmem>>) attributes {dimension_semantics = [#tpu.dimension_semantics<parallel>, #tpu.dimension_semantics<arbitrary>, #tpu.dimension_semantics<arbitrary>], iteration_bounds = array<i64: 1, 1, 1>, scalar_prefetch = 0 : i64, scratch_operands = 1 : i64, tpu.core_type = #tpu.core_type<tc>, window_params = [{transform_indices = @transform_0, window_bounds = array<i64: 32, 32>}, {transform_indices = @transform_1, window_bounds = array<i64: 32, 32>}, {transform_indices = @transform_2, window_bounds = array<i64: 32, 32>}, {transform_indices = @transform_3, window_bounds = array<i64: 32, 32>}, {transform_indices = @transform_4, window_bounds = array<i64: 32, 32>}, {transform_indices = @transform_5, window_bounds = array<i64: 32, 32>}, {transform_indices = @transform_6, window_bounds = array<i64: 32, 32>}, {transform_indices = @transform_7, window_bounds = array<i64: 1, 8, 128>}, {transform_indices = @transform_8, window_bounds = array<i64: 1, 8, 128>}]} {
    %c0_i32 = arith.constant 0 : i32
    %0 = arith.cmpi eq, %arg1, %c0_i32 : i32
    %c0_i32_0 = arith.constant 0 : i32
    %1 = arith.cmpi eq, %arg2, %c0_i32_0 : i32
    %2 = arith.andi %0, %1 : i1
    %3 = arith.extui %2 : i1 to i32
    %c0_i32_1 = arith.constant 0 : i32
    %4 = arith.cmpi ne, %3, %c0_i32_1 : i32
    scf.if %4 {
      %cst_13 = arith.constant 0.000000e+00 : f32
      %17 = vector.broadcast %cst_13 : f32 to vector<1x8x128xf32>
      %c0_14 = arith.constant 0 : index
      %c0_15 = arith.constant 0 : index
      %c0_16 = arith.constant 0 : index
      %18 = vector.load %arg10[%c0_14, %c0_15, %c0_16] : memref<1x8x128xf32, #tpu.memory_space<vmem>>, vector<1x8x128xf32>
      tpu.vector_store %arg10[%c0_14, %c0_15, %c0_16], %17 {strides = array<i32>} : memref<1x8x128xf32, #tpu.memory_space<vmem>>, vector<1x8x128xf32>,
      %cst_17 = arith.constant 0.000000e+00 : f32
      %19 = vector.broadcast %cst_17 : f32 to vector<1x8x128xf32>
      %c0_18 = arith.constant 0 : index
      %c0_19 = arith.constant 0 : index
      %c0_20 = arith.constant 0 : index
      %20 = vector.load %arg11[%c0_18, %c0_19, %c0_20] : memref<1x8x128xf32, #tpu.memory_space<vmem>>, vector<1x8x128xf32>
      tpu.vector_store %arg11[%c0_18, %c0_19, %c0_20], %19 {strides = array<i32>} : memref<1x8x128xf32, #tpu.memory_space<vmem>>, vector<1x8x128xf32>,
    } else {
    }
    %c0_i32_2 = arith.constant 0 : i32
    %5 = arith.cmpi eq, %arg2, %c0_i32_2 : i32
    %6 = arith.extui %5 : i1 to i32
    %c0_i32_3 = arith.constant 0 : i32
    %7 = arith.cmpi ne, %6, %c0_i32_3 : i32
    scf.if %7 {
      %cst_13 = arith.constant 0.000000e+00 : f32
      %17 = vector.broadcast %cst_13 : f32 to vector<32x32xf32>
      %c0_14 = arith.constant 0 : index
      %c0_15 = arith.constant 0 : index
      %18 = vector.load %arg12[%c0_14, %c0_15] : memref<32x32xf32, #tpu.memory_space<vmem>>, vector<32x32xf32>
      tpu.vector_store %arg12[%c0_14, %c0_15], %17 {strides = array<i32>} : memref<32x32xf32, #tpu.memory_space<vmem>>, vector<32x32xf32>,
    } else {
    }
    %c0 = arith.constant 0 : index
    %c0_4 = arith.constant 0 : index
    %8 = vector.load %arg12[%c0, %c0_4] : memref<32x32xf32, #tpu.memory_space<vmem>>, vector<32x32xf32>
    %c0_5 = arith.constant 0 : index
    %c0_6 = arith.constant 0 : index
    %9 = vector.load %arg3[%c0_5, %c0_6] : memref<32x32xbf16, #tpu.memory_space<vmem>>, vector<32x32xbf16>
    %c0_7 = arith.constant 0 : index
    %c0_8 = arith.constant 0 : index
    %10 = vector.load %arg6[%c0_7, %c0_8] : memref<32x32xbf16, #tpu.memory_space<vmem>>, vector<32x32xbf16>
    %cst = arith.constant dense<0.000000e+00> : vector<32x32xf32>
    %11 = tpu.matmul %9, %10, %cst {dimension_numbers = #tpu.dot_dimension_numbers<[1], [0], [0], [1], [0, 0, 1, 1], [], []>} : vector<32x32xbf16>, vector<32x32xbf16>, vector<32x32xf32> -> vector<32x32xf32>
    %12 = arith.addf %8, %11 : vector<32x32xf32>
    %c0_9 = arith.constant 0 : index
    %c0_10 = arith.constant 0 : index
    %13 = vector.load %arg12[%c0_9, %c0_10] : memref<32x32xf32, #tpu.memory_space<vmem>>, vector<32x32xf32>
    tpu.vector_store %arg12[%c0_9, %c0_10], %12 {strides = array<i32>} : memref<32x32xf32, #tpu.memory_space<vmem>>, vector<32x32xf32>,
    %c0_i32_11 = arith.constant 0 : i32
    %14 = arith.cmpi eq, %arg2, %c0_i32_11 : i32
    %15 = arith.extui %14 : i1 to i32
    %c0_i32_12 = arith.constant 0 : i32
    %16 = arith.cmpi ne, %15, %c0_i32_12 : i32
    scf.if %16 {
      %c0_13 = arith.constant 0 : index
      %c0_14 = arith.constant 0 : index
      %17 = vector.load %arg12[%c0_13, %c0_14] : memref<32x32xf32, #tpu.memory_space<vmem>>, vector<32x32xf32>
      %cst_15 = arith.constant 5.000000e-01 : f32
      %18 = vector.broadcast %cst_15 : f32 to vector<32x32xf32>
      %19 = arith.mulf %18, %17 : vector<32x32xf32>
      %cst_16 = arith.constant 4.471500e-02 : f32
      %20 = vector.broadcast %cst_16 : f32 to vector<32x32xf32>
      %21 = arith.mulf %20, %17 : vector<32x32xf32>
      %22 = arith.mulf %21, %17 : vector<32x32xf32>
      %23 = arith.mulf %22, %17 : vector<32x32xf32>
      %24 = arith.addf %17, %23 : vector<32x32xf32>
      %cst_17 = arith.constant 0.797884583 : f32
      %25 = vector.broadcast %cst_17 : f32 to vector<32x32xf32>
      %26 = arith.mulf %25, %24 : vector<32x32xf32>
      %27 = math.tanh %26 : vector<32x32xf32>
      %cst_18 = arith.constant 1.000000e+00 : f32
      %28 = vector.broadcast %cst_18 : f32 to vector<32x32xf32>
      %29 = arith.addf %28, %27 : vector<32x32xf32>
      %30 = arith.mulf %19, %29 : vector<32x32xf32>
      %c0_19 = arith.constant 0 : index
      %c0_20 = arith.constant 0 : index
      %31 = vector.load %arg4[%c0_19, %c0_20] : memref<32x32xf32, #tpu.memory_space<vmem>>, vector<32x32xf32>
      %32 = arith.addf %31, %30 : vector<32x32xf32>
      %c0_21 = arith.constant 0 : index
      %c0_22 = arith.constant 0 : index
      %33 = vector.load %arg7[%c0_21, %c0_22] : memref<32x32xf32, #tpu.memory_space<vmem>>, vector<32x32xf32>
      tpu.vector_store %arg7[%c0_21, %c0_22], %32 {strides = array<i32>} : memref<32x32xf32, #tpu.memory_space<vmem>>, vector<32x32xf32>,
      %34 = arith.truncf %32 : vector<32x32xf32> to vector<32x32xbf16>
      %c0_23 = arith.constant 0 : index
      %c0_24 = arith.constant 0 : index
      %35 = vector.load %arg8[%c0_23, %c0_24] : memref<32x32xbf16, #tpu.memory_space<vmem>>, vector<32x32xbf16>
      tpu.vector_store %arg8[%c0_23, %c0_24], %34 {strides = array<i32>} : memref<32x32xbf16, #tpu.memory_space<vmem>>, vector<32x32xbf16>,
      %36 = arith.truncf %30 : vector<32x32xf32> to vector<32x32xbf16>
      %c0_25 = arith.constant 0 : index
      %c0_26 = arith.constant 0 : index
      %37 = vector.load %arg9[%c0_25, %c0_26] : memref<32x32xbf16, #tpu.memory_space<vmem>>, vector<32x32xbf16>
      tpu.vector_store %arg9[%c0_25, %c0_26], %36 {strides = array<i32>} : memref<32x32xbf16, #tpu.memory_space<vmem>>, vector<32x32xbf16>,
      %c0_27 = arith.constant 0 : index
      %c0_28 = arith.constant 0 : index
      %38 = vector.load %arg5[%c0_27, %c0_28] : memref<32x32xbf16, #tpu.memory_space<vmem>>, vector<32x32xbf16>
      %39 = arith.extf %38 : vector<32x32xbf16> to vector<32x32xf32>
      %c0_29 = arith.constant 0 : index
      %c0_30 = arith.constant 0 : index
      %c0_31 = arith.constant 0 : index
      %40 = vector.load %arg10[%c0_29, %c0_30, %c0_31] : memref<1x8x128xf32, #tpu.memory_space<vmem>>, vector<1x8x128xf32>
      %41 = arith.subf %39, %30 : vector<32x32xf32>
      %42 = math.absf %41 : vector<32x32xf32>
      %43 = vector.shape_cast %42 : vector<32x32xf32> to vector<1x32x32xf32>
      %cst_32 = arith.constant dense<0.000000e+00> : vector<1xf32>
      %44 = vector.multi_reduction <add>, %43, %cst_32 [1, 2] : vector<1x32x32xf32> to vector<1xf32>
      %45 = vector.shape_cast %44 : vector<1xf32> to vector<1x1x1xf32>
      %46 = vector.extract %45[0, 0, 0] : f32 from vector<1x1x1xf32>
      %47 = vector.broadcast %46 : f32 to vector<1x8x128xf32>
      %48 = arith.addf %40, %47 : vector<1x8x128xf32>
      %c0_33 = arith.constant 0 : index
      %c0_34 = arith.constant 0 : index
      %c0_35 = arith.constant 0 : index
      %49 = vector.load %arg10[%c0_33, %c0_34, %c0_35] : memref<1x8x128xf32, #tpu.memory_space<vmem>>, vector<1x8x128xf32>
      tpu.vector_store %arg10[%c0_33, %c0_34, %c0_35], %48 {strides = array<i32>} : memref<1x8x128xf32, #tpu.memory_space<vmem>>, vector<1x8x128xf32>,
      %c0_36 = arith.constant 0 : index
      %c0_37 = arith.constant 0 : index
      %c0_38 = arith.constant 0 : index
      %50 = vector.load %arg11[%c0_36, %c0_37, %c0_38] : memref<1x8x128xf32, #tpu.memory_space<vmem>>, vector<1x8x128xf32>
      %51 = math.absf %39 : vector<32x32xf32>
      %52 = vector.shape_cast %51 : vector<32x32xf32> to vector<1x32x32xf32>
      %cst_39 = arith.constant dense<0.000000e+00> : vector<1xf32>
      %53 = vector.multi_reduction <add>, %52, %cst_39 [1, 2] : vector<1x32x32xf32> to vector<1xf32>
      %54 = vector.shape_cast %53 : vector<1xf32> to vector<1x1x1xf32>
      %55 = vector.extract %54[0, 0, 0] : f32 from vector<1x1x1xf32>
      %56 = vector.broadcast %55 : f32 to vector<1x8x128xf32>
      %57 = arith.addf %50, %56 : vector<1x8x128xf32>
      %c0_40 = arith.constant 0 : index
      %c0_41 = arith.constant 0 : index
      %c0_42 = arith.constant 0 : index
      %58 = vector.load %arg11[%c0_40, %c0_41, %c0_42] : memref<1x8x128xf32, #tpu.memory_space<vmem>>, vector<1x8x128xf32>
      tpu.vector_store %arg11[%c0_40, %c0_41, %c0_42], %57 {strides = array<i32>} : memref<1x8x128xf32, #tpu.memory_space<vmem>>, vector<1x8x128xf32>,
    } else {
    }
    return
  }
  func.func @transform_0(%arg0: i32, %arg1: i32, %arg2: i32) -> (i32, i32) {
    %c0_i32 = arith.constant 0 : i32
    return %arg0, %arg2 : i32, i32
  }
  func.func @transform_1(%arg0: i32, %arg1: i32, %arg2: i32) -> (i32, i32) {
    %c0_i32 = arith.constant 0 : i32
    return %arg0, %arg1 : i32, i32
  }
  func.func @transform_2(%arg0: i32, %arg1: i32, %arg2: i32) -> (i32, i32) {
    %c0_i32 = arith.constant 0 : i32
    return %arg0, %arg1 : i32, i32
  }
  func.func @transform_3(%arg0: i32, %arg1: i32, %arg2: i32) -> (i32, i32) {
    %c0_i32 = arith.constant 0 : i32
    return %arg2, %arg1 : i32, i32
  }
  func.func @transform_4(%arg0: i32, %arg1: i32, %arg2: i32) -> (i32, i32) {
    %c0_i32 = arith.constant 0 : i32
    return %arg0, %arg1 : i32, i32
  }
  func.func @transform_5(%arg0: i32, %arg1: i32, %arg2: i32) -> (i32, i32) {
    %c0_i32 = arith.constant 0 : i32
    return %arg0, %arg1 : i32, i32
  }
  func.func @transform_6(%arg0: i32, %arg1: i32, %arg2: i32) -> (i32, i32) {
    %c0_i32 = arith.constant 0 : i32
    return %arg0, %arg1 : i32, i32
  }
  func.func @transform_7(%arg0: i32, %arg1: i32, %arg2: i32) -> (i32, i32, i32) {
    %c0_i32 = arith.constant 0 : i32
    %c0_i32_0 = arith.constant 0 : i32
    %c0_i32_1 = arith.constant 0 : i32
    return %arg0, %c0_i32, %c0_i32_0 : i32, i32, i32
  }
  func.func @transform_8(%arg0: i32, %arg1: i32, %arg2: i32) -> (i32, i32, i32) {
    %c0_i32 = arith.constant 0 : i32
    %c0_i32_0 = arith.constant 0 : i32
    %c0_i32_1 = arith.constant 0 : i32
    return %arg0, %c0_i32, %c0_i32_0 : i32, i32, i32
  }
}

module attributes {stable_mosaic.version = 11 : i64} {
  func.func @_block_kernel(%arg0: i32, %arg1: i32, %arg2: i32, %arg3: memref<48x32xbf16, #tpu.memory_space<vmem>>, %arg4: memref<48x32xf32, #tpu.memory_space<vmem>>, %arg5: memref<32x32xbf16, #tpu.memory_space<vmem>>, %arg6: memref<48x32xf32, #tpu.memory_space<vmem>>, %arg7: memref<48x32xbf16, #tpu.memory_space<vmem>>, %arg8: memref<48x32xf32, #tpu.memory_space<vmem>>) attributes {dimension_semantics = [#tpu.dimension_semantics<parallel>, #tpu.dimension_semantics<parallel>, #tpu.dimension_semantics<arbitrary>], iteration_bounds = array<i64: 1, 1, 1>, scalar_prefetch = 0 : i64, scratch_operands = 1 : i64, tpu.core_type = #tpu.core_type<tc>, window_params = [{transform_indices = @transform_0, window_bounds = array<i64: 48, 32>}, {transform_indices = @transform_1, window_bounds = array<i64: 48, 32>}, {transform_indices = @transform_2, window_bounds = array<i64: 32, 32>}, {transform_indices = @transform_3, window_bounds = array<i64: 48, 32>}, {transform_indices = @transform_4, window_bounds = array<i64: 48, 32>}]} {
    %c0_i32 = arith.constant 0 : i32
    %0 = arith.cmpi eq, %arg2, %c0_i32 : i32
    %1 = arith.extui %0 : i1 to i32
    %c0_i32_0 = arith.constant 0 : i32
    %2 = arith.cmpi ne, %1, %c0_i32_0 : i32
    scf.if %2 {
      %cst_10 = arith.constant 0.000000e+00 : f32
      %12 = vector.broadcast %cst_10 : f32 to vector<48x32xf32>
      %c0_11 = arith.constant 0 : index
      %c0_12 = arith.constant 0 : index
      %13 = vector.load %arg8[%c0_11, %c0_12] : memref<48x32xf32, #tpu.memory_space<vmem>>, vector<48x32xf32>
      tpu.vector_store %arg8[%c0_11, %c0_12], %12 {strides = array<i32>} : memref<48x32xf32, #tpu.memory_space<vmem>>, vector<48x32xf32>,
    } else {
    }
    %c0 = arith.constant 0 : index
    %c0_1 = arith.constant 0 : index
    %3 = vector.load %arg8[%c0, %c0_1] : memref<48x32xf32, #tpu.memory_space<vmem>>, vector<48x32xf32>
    %c0_2 = arith.constant 0 : index
    %c0_3 = arith.constant 0 : index
    %4 = vector.load %arg3[%c0_2, %c0_3] : memref<48x32xbf16, #tpu.memory_space<vmem>>, vector<48x32xbf16>
    %c0_4 = arith.constant 0 : index
    %c0_5 = arith.constant 0 : index
    %5 = vector.load %arg5[%c0_4, %c0_5] : memref<32x32xbf16, #tpu.memory_space<vmem>>, vector<32x32xbf16>
    %cst = arith.constant dense<0.000000e+00> : vector<48x32xf32>
    %6 = tpu.matmul %4, %5, %cst {dimension_numbers = #tpu.dot_dimension_numbers<[1], [0], [0], [1], [0, 0, 1, 1], [], []>} : vector<48x32xbf16>, vector<32x32xbf16>, vector<48x32xf32> -> vector<48x32xf32>
    %7 = arith.addf %3, %6 : vector<48x32xf32>
    %c0_6 = arith.constant 0 : index
    %c0_7 = arith.constant 0 : index
    %8 = vector.load %arg8[%c0_6, %c0_7] : memref<48x32xf32, #tpu.memory_space<vmem>>, vector<48x32xf32>
    tpu.vector_store %arg8[%c0_6, %c0_7], %7 {strides = array<i32>} : memref<48x32xf32, #tpu.memory_space<vmem>>, vector<48x32xf32>,
    %c0_i32_8 = arith.constant 0 : i32
    %9 = arith.cmpi eq, %arg2, %c0_i32_8 : i32
    %10 = arith.extui %9 : i1 to i32
    %c0_i32_9 = arith.constant 0 : i32
    %11 = arith.cmpi ne, %10, %c0_i32_9 : i32
    scf.if %11 {
      %c0_10 = arith.constant 0 : index
      %c0_11 = arith.constant 0 : index
      %12 = vector.load %arg4[%c0_10, %c0_11] : memref<48x32xf32, #tpu.memory_space<vmem>>, vector<48x32xf32>
      %c0_12 = arith.constant 0 : index
      %c0_13 = arith.constant 0 : index
      %13 = vector.load %arg8[%c0_12, %c0_13] : memref<48x32xf32, #tpu.memory_space<vmem>>, vector<48x32xf32>
      %cst_14 = arith.constant 5.000000e-01 : f32
      %14 = vector.broadcast %cst_14 : f32 to vector<48x32xf32>
      %15 = arith.mulf %14, %13 : vector<48x32xf32>
      %cst_15 = arith.constant 4.471500e-02 : f32
      %16 = vector.broadcast %cst_15 : f32 to vector<48x32xf32>
      %17 = arith.mulf %16, %13 : vector<48x32xf32>
      %18 = arith.mulf %17, %13 : vector<48x32xf32>
      %19 = arith.mulf %18, %13 : vector<48x32xf32>
      %20 = arith.addf %13, %19 : vector<48x32xf32>
      %cst_16 = arith.constant 0.797884583 : f32
      %21 = vector.broadcast %cst_16 : f32 to vector<48x32xf32>
      %22 = arith.mulf %21, %20 : vector<48x32xf32>
      %23 = math.tanh %22 : vector<48x32xf32>
      %cst_17 = arith.constant 1.000000e+00 : f32
      %24 = vector.broadcast %cst_17 : f32 to vector<48x32xf32>
      %25 = arith.addf %24, %23 : vector<48x32xf32>
      %26 = arith.mulf %15, %25 : vector<48x32xf32>
      %27 = arith.addf %12, %26 : vector<48x32xf32>
      %c0_18 = arith.constant 0 : index
      %c0_19 = arith.constant 0 : index
      %28 = vector.load %arg6[%c0_18, %c0_19] : memref<48x32xf32, #tpu.memory_space<vmem>>, vector<48x32xf32>
      tpu.vector_store %arg6[%c0_18, %c0_19], %27 {strides = array<i32>} : memref<48x32xf32, #tpu.memory_space<vmem>>, vector<48x32xf32>,
      %29 = arith.truncf %27 : vector<48x32xf32> to vector<48x32xbf16>
      %c0_20 = arith.constant 0 : index
      %c0_21 = arith.constant 0 : index
      %30 = vector.load %arg7[%c0_20, %c0_21] : memref<48x32xbf16, #tpu.memory_space<vmem>>, vector<48x32xbf16>
      tpu.vector_store %arg7[%c0_20, %c0_21], %29 {strides = array<i32>} : memref<48x32xbf16, #tpu.memory_space<vmem>>, vector<48x32xbf16>,
    } else {
    }
    return
  }
  func.func @transform_0(%arg0: i32, %arg1: i32, %arg2: i32) -> (i32, i32) {
    %c0_i32 = arith.constant 0 : i32
    return %arg0, %arg2 : i32, i32
  }
  func.func @transform_1(%arg0: i32, %arg1: i32, %arg2: i32) -> (i32, i32) {
    %c0_i32 = arith.constant 0 : i32
    return %arg0, %arg1 : i32, i32
  }
  func.func @transform_2(%arg0: i32, %arg1: i32, %arg2: i32) -> (i32, i32) {
    %c0_i32 = arith.constant 0 : i32
    return %arg2, %arg1 : i32, i32
  }
  func.func @transform_3(%arg0: i32, %arg1: i32, %arg2: i32) -> (i32, i32) {
    %c0_i32 = arith.constant 0 : i32
    return %arg0, %arg1 : i32, i32
  }
  func.func @transform_4(%arg0: i32, %arg1: i32, %arg2: i32) -> (i32, i32) {
    %c0_i32 = arith.constant 0 : i32
    return %arg0, %arg1 : i32, i32
  }
}

module attributes {stable_mosaic.version = 11 : i64} {
  func.func @_block_res_kernel(%arg0: i32, %arg1: i32, %arg2: i32, %arg3: memref<48x32xbf16, #tpu.memory_space<vmem>>, %arg4: memref<48x32xf32, #tpu.memory_space<vmem>>, %arg5: memref<48x32xf32, #tpu.memory_space<vmem>>, %arg6: memref<32x32xbf16, #tpu.memory_space<vmem>>, %arg7: memref<48x32xf32, #tpu.memory_space<vmem>>, %arg8: memref<48x32xf32, #tpu.memory_space<vmem>>, %arg9: memref<48x32xf32, #tpu.memory_space<vmem>>) attributes {dimension_semantics = [#tpu.dimension_semantics<parallel>, #tpu.dimension_semantics<parallel>, #tpu.dimension_semantics<arbitrary>], iteration_bounds = array<i64: 1, 1, 1>, scalar_prefetch = 0 : i64, scratch_operands = 1 : i64, tpu.core_type = #tpu.core_type<tc>, window_params = [{transform_indices = @transform_0, window_bounds = array<i64: 48, 32>}, {transform_indices = @transform_1, window_bounds = array<i64: 48, 32>}, {transform_indices = @transform_2, window_bounds = array<i64: 48, 32>}, {transform_indices = @transform_3, window_bounds = array<i64: 32, 32>}, {transform_indices = @transform_4, window_bounds = array<i64: 48, 32>}, {transform_indices = @transform_5, window_bounds = array<i64: 48, 32>}]} {
    %c0_i32 = arith.constant 0 : i32
    %0 = arith.cmpi eq, %arg2, %c0_i32 : i32
    %1 = arith.extui %0 : i1 to i32
    %c0_i32_0 = arith.constant 0 : i32
    %2 = arith.cmpi ne, %1, %c0_i32_0 : i32
    scf.if %2 {
      %cst_10 = arith.constant 0.000000e+00 : f32
      %12 = vector.broadcast %cst_10 : f32 to vector<48x32xf32>
      %c0_11 = arith.constant 0 : index
      %c0_12 = arith.constant 0 : index
      %13 = vector.load %arg9[%c0_11, %c0_12] : memref<48x32xf32, #tpu.memory_space<vmem>>, vector<48x32xf32>
      tpu.vector_store %arg9[%c0_11, %c0_12], %12 {strides = array<i32>} : memref<48x32xf32, #tpu.memory_space<vmem>>, vector<48x32xf32>,
    } else {
    }
    %c0 = arith.constant 0 : index
    %c0_1 = arith.constant 0 : index
    %3 = vector.load %arg9[%c0, %c0_1] : memref<48x32xf32, #tpu.memory_space<vmem>>, vector<48x32xf32>
    %c0_2 = arith.constant 0 : index
    %c0_3 = arith.constant 0 : index
    %4 = vector.load %arg3[%c0_2, %c0_3] : memref<48x32xbf16, #tpu.memory_space<vmem>>, vector<48x32xbf16>
    %c0_4 = arith.constant 0 : index
    %c0_5 = arith.constant 0 : index
    %5 = vector.load %arg6[%c0_4, %c0_5] : memref<32x32xbf16, #tpu.memory_space<vmem>>, vector<32x32xbf16>
    %cst = arith.constant dense<0.000000e+00> : vector<48x32xf32>
    %6 = tpu.matmul %4, %5, %cst {dimension_numbers = #tpu.dot_dimension_numbers<[1], [0], [0], [1], [0, 0, 1, 1], [], []>} : vector<48x32xbf16>, vector<32x32xbf16>, vector<48x32xf32> -> vector<48x32xf32>
    %7 = arith.addf %3, %6 : vector<48x32xf32>
    %c0_6 = arith.constant 0 : index
    %c0_7 = arith.constant 0 : index
    %8 = vector.load %arg9[%c0_6, %c0_7] : memref<48x32xf32, #tpu.memory_space<vmem>>, vector<48x32xf32>
    tpu.vector_store %arg9[%c0_6, %c0_7], %7 {strides = array<i32>} : memref<48x32xf32, #tpu.memory_space<vmem>>, vector<48x32xf32>,
    %c0_i32_8 = arith.constant 0 : i32
    %9 = arith.cmpi eq, %arg2, %c0_i32_8 : i32
    %10 = arith.extui %9 : i1 to i32
    %c0_i32_9 = arith.constant 0 : i32
    %11 = arith.cmpi ne, %10, %c0_i32_9 : i32
    scf.if %11 {
      %c0_10 = arith.constant 0 : index
      %c0_11 = arith.constant 0 : index
      %12 = vector.load %arg4[%c0_10, %c0_11] : memref<48x32xf32, #tpu.memory_space<vmem>>, vector<48x32xf32>
      %c0_12 = arith.constant 0 : index
      %c0_13 = arith.constant 0 : index
      %13 = vector.load %arg9[%c0_12, %c0_13] : memref<48x32xf32, #tpu.memory_space<vmem>>, vector<48x32xf32>
      %cst_14 = arith.constant 5.000000e-01 : f32
      %14 = vector.broadcast %cst_14 : f32 to vector<48x32xf32>
      %15 = arith.mulf %14, %13 : vector<48x32xf32>
      %cst_15 = arith.constant 4.471500e-02 : f32
      %16 = vector.broadcast %cst_15 : f32 to vector<48x32xf32>
      %17 = arith.mulf %16, %13 : vector<48x32xf32>
      %18 = arith.mulf %17, %13 : vector<48x32xf32>
      %19 = arith.mulf %18, %13 : vector<48x32xf32>
      %20 = arith.addf %13, %19 : vector<48x32xf32>
      %cst_16 = arith.constant 0.797884583 : f32
      %21 = vector.broadcast %cst_16 : f32 to vector<48x32xf32>
      %22 = arith.mulf %21, %20 : vector<48x32xf32>
      %23 = math.tanh %22 : vector<48x32xf32>
      %cst_17 = arith.constant 1.000000e+00 : f32
      %24 = vector.broadcast %cst_17 : f32 to vector<48x32xf32>
      %25 = arith.addf %24, %23 : vector<48x32xf32>
      %26 = arith.mulf %15, %25 : vector<48x32xf32>
      %27 = arith.addf %12, %26 : vector<48x32xf32>
      %c0_18 = arith.constant 0 : index
      %c0_19 = arith.constant 0 : index
      %28 = vector.load %arg7[%c0_18, %c0_19] : memref<48x32xf32, #tpu.memory_space<vmem>>, vector<48x32xf32>
      tpu.vector_store %arg7[%c0_18, %c0_19], %27 {strides = array<i32>} : memref<48x32xf32, #tpu.memory_space<vmem>>, vector<48x32xf32>,
      %c0_20 = arith.constant 0 : index
      %c0_21 = arith.constant 0 : index
      %29 = vector.load %arg5[%c0_20, %c0_21] : memref<48x32xf32, #tpu.memory_space<vmem>>, vector<48x32xf32>
      %30 = arith.subf %27, %29 : vector<48x32xf32>
      %c0_22 = arith.constant 0 : index
      %c0_23 = arith.constant 0 : index
      %31 = vector.load %arg8[%c0_22, %c0_23] : memref<48x32xf32, #tpu.memory_space<vmem>>, vector<48x32xf32>
      tpu.vector_store %arg8[%c0_22, %c0_23], %30 {strides = array<i32>} : memref<48x32xf32, #tpu.memory_space<vmem>>, vector<48x32xf32>,
    } else {
    }
    return
  }
  func.func @transform_0(%arg0: i32, %arg1: i32, %arg2: i32) -> (i32, i32) {
    %c0_i32 = arith.constant 0 : i32
    return %arg0, %arg2 : i32, i32
  }
  func.func @transform_1(%arg0: i32, %arg1: i32, %arg2: i32) -> (i32, i32) {
    %c0_i32 = arith.constant 0 : i32
    return %arg0, %arg1 : i32, i32
  }
  func.func @transform_2(%arg0: i32, %arg1: i32, %arg2: i32) -> (i32, i32) {
    %c0_i32 = arith.constant 0 : i32
    return %arg0, %arg1 : i32, i32
  }
  func.func @transform_3(%arg0: i32, %arg1: i32, %arg2: i32) -> (i32, i32) {
    %c0_i32 = arith.constant 0 : i32
    return %arg2, %arg1 : i32, i32
  }
  func.func @transform_4(%arg0: i32, %arg1: i32, %arg2: i32) -> (i32, i32) {
    %c0_i32 = arith.constant 0 : i32
    return %arg0, %arg1 : i32, i32
  }
  func.func @transform_5(%arg0: i32, %arg1: i32, %arg2: i32) -> (i32, i32) {
    %c0_i32 = arith.constant 0 : i32
    return %arg0, %arg1 : i32, i32
  }
}

module attributes {stable_mosaic.version = 11 : i64} {
  func.func @_add_kernel(%arg0: i32, %arg1: memref<16x32xf32, #tpu.memory_space<vmem>>, %arg2: memref<16x32xf32, #tpu.memory_space<vmem>>, %arg3: memref<16x32xf32, #tpu.memory_space<vmem>>) attributes {dimension_semantics = [#tpu.dimension_semantics<parallel>], iteration_bounds = array<i64: 1>, scalar_prefetch = 0 : i64, scratch_operands = 0 : i64, tpu.core_type = #tpu.core_type<tc>, window_params = [{transform_indices = @transform_0, window_bounds = array<i64: 16, 32>}, {transform_indices = @transform_1, window_bounds = array<i64: 16, 32>}, {transform_indices = @transform_2, window_bounds = array<i64: 16, 32>}]} {
    %c0 = arith.constant 0 : index
    %c0_0 = arith.constant 0 : index
    %0 = vector.load %arg1[%c0, %c0_0] : memref<16x32xf32, #tpu.memory_space<vmem>>, vector<16x32xf32>
    %c0_1 = arith.constant 0 : index
    %c0_2 = arith.constant 0 : index
    %1 = vector.load %arg2[%c0_1, %c0_2] : memref<16x32xf32, #tpu.memory_space<vmem>>, vector<16x32xf32>
    %2 = arith.addf %0, %1 : vector<16x32xf32>
    %c0_3 = arith.constant 0 : index
    %c0_4 = arith.constant 0 : index
    %3 = vector.load %arg3[%c0_3, %c0_4] : memref<16x32xf32, #tpu.memory_space<vmem>>, vector<16x32xf32>
    tpu.vector_store %arg3[%c0_3, %c0_4], %2 {strides = array<i32>} : memref<16x32xf32, #tpu.memory_space<vmem>>, vector<16x32xf32>,
    return
  }
  func.func @transform_0(%arg0: i32) -> (i32, i32) {
    %c0_i32 = arith.constant 0 : i32
    %c0_i32_0 = arith.constant 0 : i32
    return %arg0, %c0_i32 : i32, i32
  }
  func.func @transform_1(%arg0: i32) -> (i32, i32) {
    %c0_i32 = arith.constant 0 : i32
    %c0_i32_0 = arith.constant 0 : i32
    return %arg0, %c0_i32 : i32, i32
  }
  func.func @transform_2(%arg0: i32) -> (i32, i32) {
    %c0_i32 = arith.constant 0 : i32
    %c0_i32_0 = arith.constant 0 : i32
    return %arg0, %c0_i32 : i32, i32
  }
}

module attributes {stable_mosaic.version = 11 : i64} {
  func.func @_add_kernel(%arg0: i32, %arg1: memref<32x32xf32, #tpu.memory_space<vmem>>, %arg2: memref<32x32xf32, #tpu.memory_space<vmem>>, %arg3: memref<32x32xf32, #tpu.memory_space<vmem>>) attributes {dimension_semantics = [#tpu.dimension_semantics<parallel>], iteration_bounds = array<i64: 1>, scalar_prefetch = 0 : i64, scratch_operands = 0 : i64, tpu.core_type = #tpu.core_type<tc>, window_params = [{transform_indices = @transform_0, window_bounds = array<i64: 32, 32>}, {transform_indices = @transform_1, window_bounds = array<i64: 32, 32>}, {transform_indices = @transform_2, window_bounds = array<i64: 32, 32>}]} {
    %c0 = arith.constant 0 : index
    %c0_0 = arith.constant 0 : index
    %0 = vector.load %arg1[%c0, %c0_0] : memref<32x32xf32, #tpu.memory_space<vmem>>, vector<32x32xf32>
    %c0_1 = arith.constant 0 : index
    %c0_2 = arith.constant 0 : index
    %1 = vector.load %arg2[%c0_1, %c0_2] : memref<32x32xf32, #tpu.memory_space<vmem>>, vector<32x32xf32>
    %2 = arith.addf %0, %1 : vector<32x32xf32>
    %c0_3 = arith.constant 0 : index
    %c0_4 = arith.constant 0 : index
    %3 = vector.load %arg3[%c0_3, %c0_4] : memref<32x32xf32, #tpu.memory_space<vmem>>, vector<32x32xf32>
    tpu.vector_store %arg3[%c0_3, %c0_4], %2 {strides = array<i32>} : memref<32x32xf32, #tpu.memory_space<vmem>>, vector<32x32xf32>,
    return
  }
  func.func @transform_0(%arg0: i32) -> (i32, i32) {
    %c0_i32 = arith.constant 0 : i32
    %c0_i32_0 = arith.constant 0 : i32
    return %arg0, %c0_i32 : i32, i32
  }
  func.func @transform_1(%arg0: i32) -> (i32, i32) {
    %c0_i32 = arith.constant 0 : i32
    %c0_i32_0 = arith.constant 0 : i32
    return %arg0, %c0_i32 : i32, i32
  }
  func.func @transform_2(%arg0: i32) -> (i32, i32) {
    %c0_i32 = arith.constant 0 : i32
    %c0_i32_0 = arith.constant 0 : i32
    return %arg0, %c0_i32 : i32, i32
  }
}

</mosaic_0001>

<bundles_post_ra>
// kernel: branch_0_fun.6
= control target key start
LH: loop header
LB: loop body
LE: loop exit
PB: predicated region body
PF: predicated region fallthrough
CT: control target
= control target key end

     0   :  { %vm21_vm0 = vcmask 261120   ;;  %v247_v1 = vmov 0.0   ;;  %vm195_vm1 = vcmask 257024   ;;  %s339_s2 = inlined_call_operand.vmem [shape: bf16[32,32], index: 2, kind: input, shape index: {}]   ;;  %s340_s0 = inlined_call_operand.vmem [shape: bf16[32,32], index: 0, kind: input, shape index: {}]   ;;  %s341_s1 = inlined_call_operand.vmem [shape: f32[32,32], index: 1, kind: input, shape index: {}]   ;;  %s342_s3 = inlined_call_operand.vmem [shape: f32[32,32], index: 3, kind: output, shape index: {0}]   ;;  %s343_s4 = inlined_call_operand.vmem [shape: bf16[32,32], index: 4, kind: output, shape index: {1}]  }
   0x1   :  { %v235_v0 = vld [vmem:[%s339_s2] sm:$0xff]   ;;  %24 = vst.msk [vmem:[#allocation2 + $0x10] sm:$0xff] %vm21_vm0, %v247_v1  ;;  %22 = vst.msk [vmem:[#allocation2] sm:$0xff] %vm21_vm0, %v247_v1  ;;  %v236_v2 = vld [vmem:[%s339_s2 + $0x8] sm:$0xff]  }
   0x2   :  { %23 = vst.msk [vmem:[#allocation2 + $0x8] sm:$0xff] %vm21_vm0, %v247_v1  ;;  %25 = vst.msk [vmem:[#allocation2 + $0x18] sm:$0xff] %vm21_vm0, %v247_v1  ;;  %226 = vmatprep.subr.bf16.mxu0 %v235_v0  ;;  %v237_v3 = vld [vmem:[%s340_s0] sm:$0xff]   ;;  %v238_v4 = vld [vmem:[%s340_s0 + $0x8] sm:$0xff]  }
   0x3   :  { %227 = vmatpush3.bf16.msra.mxu0 %v235_v0  ;;  %230 = vmatprep.mubr.msk.bf16.mxu0 %vm21_vm0, %v237_v3  ;;  %v129_v46 = vld [vmem:[%s341_s1 + $0x10] sm:$0xff]  ;;  %v127_v51 = vld [vmem:[%s341_s1] sm:$0xff]  ;;  %v130_v55 = vld [vmem:[%s341_s1 + $0x18] sm:$0xff] }
   0x4   :  { %228 = vmatprep.subr.bf16.mxu0 %v236_v2  ;;  %v128_v60 = vld [vmem:[%s341_s1 + $0x8] sm:$0xff] }
   0x7   :  { %229 = vmatpush3.bf16.msra.mxu0 %v236_v2 }
   0x8   :  { %v28_v5 = vld [vmem:[#allocation2 + $0x10] sm:$0xff]  ;;  %v26_v6 = vld [vmem:[#allocation2] sm:$0xff] }
   0x9   :  { %v29_v8 = vld [vmem:[#allocation2 + $0x18] sm:$0xff]  ;;  %v27_v11 = vld [vmem:[#allocation2 + $0x8] sm:$0xff] }
   0xa   :  { %231 = vmatmul.mubr.msk.bf16.vlgmr.msra.gmra.mrb[0].mxu0 %vm21_vm0, %v238_v4 }
  0xdd   :  { %v232_v7 = vpop.f32.mrb[0].mxu0 }
  0xde   :  { %v118_v9 = vadd.f32 %v232_v7, %v28_v5  ;;  %v101_v10 = vpop.f32.mrb[1].mxu0 }
  0xdf   :  { %v116_v12 = vadd.f32 %v101_v10, %v26_v6  ;;  %v233_v13 = vpop.f32.mrb[2].mxu0 }
  0xe0   :  { %122 = vst.msk [vmem:[#allocation2 + $0x10] sm:$0xff] %vm21_vm0, %v118_v9  ;;  %v119_v14 = vadd.f32 %v233_v13, %v29_v8  ;;  %v104_v15 = vpop.f32.mrb[3].mxu0 }
  0xe1   :  { %120 = vst.msk [vmem:[#allocation2] sm:$0xff] %vm21_vm0, %v116_v12  ;;  %v117_v16 = vadd.f32 %v104_v15, %v27_v11 }
  0xe2   :  { %123 = vst.msk [vmem:[#allocation2 + $0x18] sm:$0xff] %vm21_vm0, %v119_v14 }
  0xe3   :  { %121 = vst.msk [vmem:[#allocation2 + $0x8] sm:$0xff] %vm21_vm0, %v117_v16 }
  0xe7   :  { %v133_v17 = vld [vmem:[#allocation2 + $0x10] sm:$0xff] }
  0xe8   :  { %v141_v18 = vmul.f32 0.044715, %v133_v17  ;;  %v131_v19 = vld [vmem:[#allocation2] sm:$0xff]  ;;  %v137_v43 = vmul.f32 0.5, %v133_v17 }
  0xe9   :  { %v139_v20 = vmul.f32 0.044715, %v131_v19  ;;  %v134_v21 = vld [vmem:[#allocation2 + $0x18] sm:$0xff]  ;;  %v135_v47 = vmul.f32 0.5, %v131_v19 }
  0xea   :  { %v145_v22 = vmul.f32 %v141_v18, %v133_v17  ;;  %v142_v23 = vmul.f32 0.044715, %v134_v21  ;;  %v132_v24 = vld [vmem:[#allocation2 + $0x8] sm:$0xff]  ;;  %v138_v52 = vmul.f32 0.5, %v134_v21 }
  0xeb   :  { %v143_v25 = vmul.f32 %v139_v20, %v131_v19  ;;  %v140_v26 = vmul.f32 0.044715, %v132_v24  ;;  %v136_v56 = vmul.f32 0.5, %v132_v24 }
  0xec   :  { %v149_v27 = vmul.f32 %v145_v22, %v133_v17  ;;  %v146_v28 = vmul.f32 %v142_v23, %v134_v21 }
  0xed   :  { %v147_v29 = vmul.f32 %v143_v25, %v131_v19  ;;  %v144_v30 = vmul.f32 %v140_v26, %v132_v24 }
  0xee   :  { %v153_v31 = vadd.f32 %v149_v27, %v133_v17  ;;  %v150_v32 = vmul.f32 %v146_v28, %v134_v21 }
  0xef   :  { %v151_v33 = vadd.f32 %v147_v29, %v131_v19  ;;  %v148_v34 = vmul.f32 %v144_v30, %v132_v24 }
  0xf0   :  { %v157_v35 = vmul.f32 0.7978846, %v153_v31  ;;  %v154_v36 = vadd.f32 %v150_v32, %v134_v21 }
  0xf1   :  { %v155_v37 = vmul.f32 0.7978846, %v151_v33  ;;  %v152_v38 = vadd.f32 %v148_v34, %v132_v24 }
  0xf2   :  { %239 = vtanh.f32 %v157_v35  ;;  %v158_v39 = vmul.f32 0.7978846, %v154_v36 }
  0xf3   :  { %241 = vtanh.f32 %v155_v37  ;;  %v156_v40 = vmul.f32 0.7978846, %v152_v38 }
  0xf4   :  { %243 = vtanh.f32 %v158_v39 }
  0xf5   :  { %245 = vtanh.f32 %v156_v40 }
  0xfc   :  { %v240_v41 = vpop.eup %239 }
  0xfd   :  { %v242_v42 = vpop.eup %241  ;;  %v165_v44 = vadd.f32 1.0, %v240_v41 }
  0xfe   :  { %v244_v45 = vpop.eup %243  ;;  %v163_v48 = vadd.f32 1.0, %v242_v42 }
  0xff   :  { %v246_v49 = vpop.eup %245  ;;  %v169_v50 = vmul.f32 %v165_v44, %v137_v43  ;;  %v166_v53 = vadd.f32 1.0, %v244_v45 }
 0x100   :  { %v167_v54 = vmul.f32 %v163_v48, %v135_v47  ;;  %v164_v57 = vadd.f32 1.0, %v246_v49 }
 0x101   :  { %v173_v58 = vadd.f32 %v169_v50, %v129_v46  ;;  %v170_v59 = vmul.f32 %v166_v53, %v138_v52 }
 0x102   :  { %v171_v61 = vadd.f32 %v167_v54, %v127_v51  ;;  %v168_v62 = vmul.f32 %v164_v57, %v136_v56 }
 0x103   :  { %177 = vst.msk [vmem:[%s342_s3 + $0x10] sm:$0xff] %vm21_vm0, %v173_v58  ;;  %v220_v63 = vpack.c.bf16 %v173_v58, %v173_v58  ;;  %v174_v0 = vadd.f32 %v170_v59, %v130_v55 }
 0x104   :  { %175 = vst.msk [vmem:[%s342_s3] sm:$0xff] %vm21_vm0, %v171_v61  ;;  %v218_v1 = vpack.c.bf16 %v171_v61, %v171_v61  ;;  %v172_v2 = vadd.f32 %v168_v62, %v128_v60 }
 0x105   :  { %198 = vst.msk [vmem:[%s343_s4 + $0x8] sm:$0xf] %vm195_vm1, %v220_v63  ;;  %v221_v3 = vpack.c.bf16 %v174_v0, %v174_v0 }
 0x106   :  { %178 = vst.msk [vmem:[%s342_s3 + $0x18] sm:$0xff] %vm21_vm0, %v174_v0  ;;  %176 = vst.msk [vmem:[%s342_s3 + $0x8] sm:$0xff] %vm21_vm0, %v172_v2  ;;  %v219_v4 = vpack.c.bf16 %v172_v2, %v172_v2 }
 0x107   :  { %196 = vst.msk [vmem:[%s343_s4] sm:$0xf] %vm195_vm1, %v218_v1  ;;  %199 = vst.msk [vmem:[%s343_s4 + $0xc] sm:$0xf] %vm195_vm1, %v221_v3 }
 0x108   :  { %197 = vst.msk [vmem:[%s343_s4 + $0x4] sm:$0xf] %vm195_vm1, %v219_v4 }

// kernel: step.3
= control target key start
LH: loop header
LB: loop body
LE: loop exit
PB: predicated region body
PF: predicated region fallthrough
CT: control target
= control target key end

     0   :  { %vm21_vm0 = vcmask 261120   ;;  %v174_v0 = vmov 0.0   ;;  %vm175_vm1 = vmmov 0   ;;  %vm135_vm2 = vcmask 257024   ;;  %s235_s2 = inlined_call_operand.vmem [shape: bf16[32,32], index: 2, kind: input, shape index: {}]   ;;  %s236_s0 = inlined_call_operand.vmem [shape: bf16[16,32], index: 0, kind: input, shape index: {}]   ;;  %s237_s1 = inlined_call_operand.vmem [shape: f32[16,32], index: 1, kind: input, shape index: {}]   ;;  %s238_s3 = inlined_call_operand.vmem [shape: f32[16,32], index: 3, kind: output, shape index: {0}]   ;;  %s239_s4 = inlined_call_operand.vmem [shape: bf16[16,32], index: 4, kind: output, shape index: {1}]  }
   0x1   :  { %157 = vmatprep.subr.bf16.mxu0 %v174_v0  ;;  %v167_v1 = vld [vmem:[%s235_s2] sm:$0xff]   ;;  %161 = vmatprep.mubr.msk.bf16.mxu0 %vm175_vm1, %v174_v0  ;;  %22 = vst.msk [vmem:[#allocation2] sm:$0xff] %vm21_vm0, %v174_v0  ;;  %23 = vst.msk [vmem:[#allocation2 + $0x8] sm:$0xff] %vm21_vm0, %v174_v0  ;;  %v168_v2 = vld [vmem:[%s235_s2 + $0x8] sm:$0xff]  }
   0x2   :  { %158 = vmatpush3.bf16.msra.mxu0 %v167_v1  ;;  %v169_v3 = vld [vmem:[%s236_s0] sm:$0xff]   ;;  %v102_v32 = vld [vmem:[%s237_s1 + $0x8] sm:$0xff] }
   0x3   :  { %159 = vmatprep.subr.bf16.mxu0 %v174_v0  ;;  %v101_v28 = vld [vmem:[%s237_s1] sm:$0xff] }
   0x6   :  { %160 = vmatpush3.bf16.msra.mxu0 %v168_v2 }
   0x8   :  { %v24_v4 = vld [vmem:[#allocation2] sm:$0xff]  ;;  %v25_v6 = vld [vmem:[#allocation2 + $0x8] sm:$0xff] }
   0x9   :  { %162 = vmatmul.mubr.msk.bf16.vlgmr.msra.gmra.mrb[0].mxu0 %vm21_vm0, %v169_v3 }
  0xdc   :  { %v87_v5 = vpop.f32.mrb[0].mxu0 }
  0xdd   :  { %v94_v7 = vadd.f32 %v87_v5, %v24_v4  ;;  %v163_v8 = vpop.f32.mrb[1].mxu0 }
  0xde   :  { %v90_v9 = vpop.f32.mrb[2].mxu0 }
  0xdf   :  { %96 = vst.msk [vmem:[#allocation2] sm:$0xff] %vm21_vm0, %v94_v7  ;;  %v95_v10 = vadd.f32 %v90_v9, %v25_v6  ;;  %v164_v11 = vpop.f32.mrb[3].mxu0 }
  0xe1   :  { %97 = vst.msk [vmem:[#allocation2 + $0x8] sm:$0xff] %vm21_vm0, %v95_v10 }
  0xe6   :  { %v103_v12 = vld [vmem:[#allocation2] sm:$0xff] }
  0xe7   :  { %v107_v13 = vmul.f32 0.044715, %v103_v12  ;;  %v105_v25 = vmul.f32 0.5, %v103_v12 }
  0xe8   :  { %v104_v14 = vld [vmem:[#allocation2 + $0x8] sm:$0xff] }
  0xe9   :  { %v109_v15 = vmul.f32 %v107_v13, %v103_v12  ;;  %v108_v16 = vmul.f32 0.044715, %v104_v14  ;;  %v106_v30 = vmul.f32 0.5, %v104_v14 }
  0xeb   :  { %v111_v17 = vmul.f32 %v109_v15, %v103_v12  ;;  %v110_v18 = vmul.f32 %v108_v16, %v104_v14 }
  0xed   :  { %v113_v19 = vadd.f32 %v111_v17, %v103_v12  ;;  %v112_v20 = vmul.f32 %v110_v18, %v104_v14 }
  0xef   :  { %v115_v21 = vmul.f32 0.7978846, %v113_v19  ;;  %v114_v22 = vadd.f32 %v112_v20, %v104_v14 }
  0xf1   :  { %170 = vtanh.f32 %v115_v21  ;;  %v116_v23 = vmul.f32 0.7978846, %v114_v22 }
  0xf3   :  { %172 = vtanh.f32 %v116_v23 }
  0xfb   :  { %v171_v24 = vpop.eup %170 }
  0xfc   :  { %v119_v26 = vadd.f32 1.0, %v171_v24 }
  0xfd   :  { %v173_v27 = vpop.eup %172 }
  0xfe   :  { %v121_v29 = vmul.f32 %v119_v26, %v105_v25  ;;  %v120_v31 = vadd.f32 1.0, %v173_v27 }
 0x100   :  { %v123_v33 = vadd.f32 %v121_v29, %v101_v28  ;;  %v122_v34 = vmul.f32 %v120_v31, %v106_v30 }
 0x102   :  { %125 = vst.msk [vmem:[%s238_s3] sm:$0xff] %vm21_vm0, %v123_v33  ;;  %v152_v35 = vpack.c.bf16 %v123_v33, %v123_v33  ;;  %v124_v36 = vadd.f32 %v122_v34, %v102_v32 }
 0x104   :  { %136 = vst.msk [vmem:[%s239_s4] sm:$0xf] %vm135_vm2, %v152_v35  ;;  %v153_v37 = vpack.c.bf16 %v124_v36, %v124_v36 }
 0x105   :  { %126 = vst.msk [vmem:[%s238_s3 + $0x8] sm:$0xff] %vm21_vm0, %v124_v36 }
 0x106   :  { %137 = vst.msk [vmem:[%s239_s4 + $0x4] sm:$0xf] %vm135_vm2, %v153_v37 }

// kernel: branch_0_fun.10
= control target key start
LH: loop header
LB: loop body
LE: loop exit
PB: predicated region body
PF: predicated region fallthrough
CT: control target
= control target key end

     0   :  { %vm21_vm0 = vcmask 261120   ;;  %v334_v0 = vmov 0.0   ;;  %vm335_vm1 = vmmov 0   ;;  %vm255_vm2 = vcmask 257024   ;;  %s464_s2 = inlined_call_operand.vmem [shape: bf16[32,32], index: 2, kind: input, shape index: {}]   ;;  %s465_s0 = inlined_call_operand.vmem [shape: bf16[48,32], index: 0, kind: input, shape index: {}]   ;;  %s466_s1 = inlined_call_operand.vmem [shape: f32[48,32], index: 1, kind: input, shape index: {}]   ;;  %s467_s3 = inlined_call_operand.vmem [shape: f32[48,32], index: 3, kind: output, shape index: {0}]   ;;  %s468_s4 = inlined_call_operand.vmem [shape: bf16[48,32], index: 4, kind: output, shape index: {1}]  }
   0x1   :  { %295 = vmatprep.subr.bf16.mxu0 %v334_v0  ;;  %311 = vmatprep.subr.bf16.mxu1 %v334_v0  ;;  %v317_v1 = vld [vmem:[%s464_s2] sm:$0xff]   ;;  %22 = vst.msk [vmem:[#allocation2] sm:$0xff] %vm21_vm0, %v334_v0  ;;  %23 = vst.msk [vmem:[#allocation2 + $0x8] sm:$0xff] %vm21_vm0, %v334_v0  ;;  %v318_v2 = vld [vmem:[%s464_s2 + $0x8] sm:$0xff]  }
   0x2   :  { %24 = vst.msk [vmem:[#allocation2 + $0x10] sm:$0xff] %vm21_vm0, %v334_v0  ;;  %25 = vst.msk [vmem:[#allocation2 + $0x18] sm:$0xff] %vm21_vm0, %v334_v0  ;;  %299 = vmatprep.mubr.msk.bf16.mxu0 %vm335_vm1, %v334_v0  ;;  %303 = vmatprep.mubr.msk.bf16.mxu1 %vm335_vm1, %v334_v0  ;;  %v319_v3 = vld [vmem:[%s465_s0] sm:$0xff]   ;;  %v320_v4 = vld [vmem:[%s465_s0 + $0x8] sm:$0xff]  }
   0x3   :  { %26 = vst.msk [vmem:[#allocation2 + $0x20] sm:$0xff] %vm21_vm0, %v334_v0  ;;  %27 = vst.msk [vmem:[#allocation2 + $0x28] sm:$0xff] %vm21_vm0, %v334_v0  ;;  %296 = vmatpush3.bf16.msra.mxu0 %v317_v1  ;;  %313 = vmatpush3.bf16.msra.mxu1 %v317_v1  ;;  %v321_v5 = vld [vmem:[%s465_s0 + $0x10] sm:$0xff]  }
   0x4   :  { %297 = vmatprep.subr.bf16.mxu0 %v334_v0  ;;  %312 = vmatprep.subr.bf16.mxu1 %v334_v0 }
   0x7   :  { %298 = vmatpush3.bf16.msra.mxu0 %v318_v2  ;;  %314 = vmatpush3.bf16.msra.mxu1 %v318_v2 }
   0x8   :  { %v28_v6 = vld [vmem:[#allocation2] sm:$0xff]  ;;  %v29_v10 = vld [vmem:[#allocation2 + $0x8] sm:$0xff] }
   0x9   :  { %v30_v7 = vld [vmem:[#allocation2 + $0x10] sm:$0xff]  ;;  %v31_v11 = vld [vmem:[#allocation2 + $0x18] sm:$0xff] }
   0xa   :  { %300 = vmatmul.mubr.msk.bf16.vlgmr.msra.gmra.mrb[0].mxu0 %vm21_vm0, %v319_v3  ;;  %304 = vmatmul.mubr.msk.bf16.vlgmr.msra.gmra.mrb[0].mxu1 %vm21_vm0, %v320_v4  ;;  %v32_v22 = vld [vmem:[#allocation2 + $0x20] sm:$0xff]  ;;  %v33_v26 = vld [vmem:[#allocation2 + $0x28] sm:$0xff] }
   0xb   :  { %307 = vmatprep.mubr.msk.bf16.mxu1 %vm335_vm1, %v334_v0 }
  0x12   :  { %308 = vmatmul.mubr.msk.bf16.gmra.mrb[4].mxu1 %vm21_vm0, %v321_v5 }
  0xdd   :  { %v115_v8 = vpop.f32.mrb[0].mxu0  ;;  %v123_v9 = vpop.f32.mrb[0].mxu1 }
  0xde   :  { %v138_v12 = vadd.f32 %v115_v8, %v28_v6  ;;  %v140_v13 = vadd.f32 %v123_v9, %v30_v7  ;;  %v301_v14 = vpop.f32.mrb[1].mxu0  ;;  %v305_v15 = vpop.f32.mrb[1].mxu1  ;;  %v153_v7 = vld [vmem:[%s466_s1] sm:$0xff] }
  0xdf   :  { %v118_v16 = vpop.f32.mrb[2].mxu0  ;;  %v126_v17 = vpop.f32.mrb[2].mxu1 }
  0xe0   :  { %144 = vst.msk [vmem:[#allocation2] sm:$0xff] %vm21_vm0, %v138_v12  ;;  %146 = vst.msk [vmem:[#allocation2 + $0x10] sm:$0xff] %vm21_vm0, %v140_v13  ;;  %v139_v18 = vadd.f32 %v118_v16, %v29_v10  ;;  %v141_v19 = vadd.f32 %v126_v17, %v31_v11  ;;  %v306_v20 = vpop.f32.mrb[3].mxu1  ;;  %v302_v21 = vpop.f32.mrb[3].mxu0  ;;  %v155_v12 = vld [vmem:[%s466_s1 + $0x10] sm:$0xff]  ;;  %v154_v16 = vld [vmem:[%s466_s1 + $0x8] sm:$0xff] }
  0xe1   :  { %v156_v21 = vld [vmem:[%s466_s1 + $0x18] sm:$0xff] }
  0xe2   :  { %145 = vst.msk [vmem:[#allocation2 + $0x8] sm:$0xff] %vm21_vm0, %v139_v18  ;;  %147 = vst.msk [vmem:[#allocation2 + $0x18] sm:$0xff] %vm21_vm0, %v141_v19 }
  0xe5   :  { %v131_v23 = vpop.f32.mrb[4].mxu1 }
  0xe6   :  { %v142_v24 = vadd.f32 %v131_v23, %v32_v22  ;;  %v309_v25 = vpop.f32.mrb[5].mxu1 }
  0xe7   :  { %v159_v27 = vld [vmem:[#allocation2] sm:$0xff]  ;;  %v161_v28 = vld [vmem:[#allocation2 + $0x10] sm:$0xff]  ;;  %v134_v29 = vpop.f32.mrb[6].mxu1 }
  0xe8   :  { %v171_v30 = vmul.f32 0.044715, %v159_v27  ;;  %v173_v31 = vmul.f32 0.044715, %v161_v28  ;;  %148 = vst.msk [vmem:[#allocation2 + $0x20] sm:$0xff] %vm21_vm0, %v142_v24  ;;  %v143_v34 = vadd.f32 %v134_v29, %v33_v26  ;;  %v310_v35 = vpop.f32.mrb[7].mxu1 }
  0xe9   :  { %v160_v32 = vld [vmem:[#allocation2 + $0x8] sm:$0xff]  ;;  %v162_v33 = vld [vmem:[#allocation2 + $0x18] sm:$0xff]  ;;  %v165_v4 = vmul.f32 0.5, %v159_v27  ;;  %v167_v8 = vmul.f32 0.5, %v161_v28 }
  0xea   :  { %v177_v36 = vmul.f32 %v171_v30, %v159_v27  ;;  %v179_v37 = vmul.f32 %v173_v31, %v161_v28  ;;  %v172_v38 = vmul.f32 0.044715, %v160_v32  ;;  %v174_v39 = vmul.f32 0.044715, %v162_v33  ;;  %149 = vst.msk [vmem:[#allocation2 + $0x28] sm:$0xff] %vm21_vm0, %v143_v34 }
  0xeb   :  { %v166_v13 = vmul.f32 0.5, %v160_v32  ;;  %v168_v17 = vmul.f32 0.5, %v162_v33 }
  0xec   :  { %v183_v40 = vmul.f32 %v177_v36, %v159_v27  ;;  %v185_v41 = vmul.f32 %v179_v37, %v161_v28  ;;  %v178_v42 = vmul.f32 %v172_v38, %v160_v32  ;;  %v180_v43 = vmul.f32 %v174_v39, %v162_v33  ;;  %v158_v39 = vld [vmem:[%s466_s1 + $0x28] sm:$0xff] }
  0xee   :  { %v189_v44 = vadd.f32 %v183_v40, %v159_v27  ;;  %v191_v45 = vadd.f32 %v185_v41, %v161_v28  ;;  %v184_v46 = vmul.f32 %v178_v42, %v160_v32  ;;  %v186_v47 = vmul.f32 %v180_v43, %v162_v33 }
  0xef   :  { %v391_v48 = vld [vmem:[#allocation2 + $0x20] sm:$0xff] }
  0xf0   :  { %v195_v49 = vmul.f32 0.7978846, %v189_v44  ;;  %v197_v50 = vmul.f32 0.7978846, %v191_v45  ;;  %v190_v51 = vadd.f32 %v184_v46, %v160_v32  ;;  %v192_v52 = vadd.f32 %v186_v47, %v162_v33  ;;  %v157_v33 = vld [vmem:[%s466_s1 + $0x20] sm:$0xff] }
  0xf1   :  { %v175_v53 = vmul.f32 0.044715, %v391_v48  ;;  %v164_v55 = vld [vmem:[#allocation2 + $0x28] sm:$0xff]  ;;  %v169_v31 = vmul.f32 0.5, %v391_v48 }
  0xf2   :  { %322 = vtanh.f32 %v195_v49  ;;  %v196_v54 = vmul.f32 0.7978846, %v190_v51  ;;  %v198_v56 = vmul.f32 0.7978846, %v192_v52  ;;  %v176_v58 = vmul.f32 0.044715, %v164_v55 }
  0xf3   :  { %324 = vtanh.f32 %v197_v50  ;;  %v181_v57 = vmul.f32 %v175_v53, %v391_v48  ;;  %v170_v36 = vmul.f32 0.5, %v164_v55 }
  0xf4   :  { %326 = vtanh.f32 %v196_v54  ;;  %v182_v60 = vmul.f32 %v176_v58, %v164_v55 }
  0xf5   :  { %328 = vtanh.f32 %v198_v56  ;;  %v187_v59 = vmul.f32 %v181_v57, %v391_v48 }
  0xf6   :  { %v188_v62 = vmul.f32 %v182_v60, %v164_v55 }
  0xf7   :  { %v193_v61 = vadd.f32 %v187_v59, %v391_v48 }
  0xf8   :  { %v194_v0 = vadd.f32 %v188_v62, %v164_v55 }
  0xf9   :  { %v199_v63 = vmul.f32 0.7978846, %v193_v61 }
  0xfa   :  { %v200_v2 = vmul.f32 0.7978846, %v194_v0 }
  0xfb   :  { %330 = vtanh.f32 %v199_v63 }
  0xfc   :  { %v323_v1 = vpop.eup %322  ;;  %332 = vtanh.f32 %v200_v2 }
  0xfd   :  { %v325_v3 = vpop.eup %324  ;;  %v207_v5 = vadd.f32 1.0, %v323_v1 }
  0xfe   :  { %v327_v6 = vpop.eup %326  ;;  %v209_v9 = vadd.f32 1.0, %v325_v3 }
  0xff   :  { %v329_v10 = vpop.eup %328  ;;  %v213_v11 = vmul.f32 %v207_v5, %v165_v4  ;;  %v208_v14 = vadd.f32 1.0, %v327_v6 }
 0x100   :  { %v215_v15 = vmul.f32 %v209_v9, %v167_v8  ;;  %v210_v18 = vadd.f32 1.0, %v329_v10 }
 0x101   :  { %v219_v19 = vadd.f32 %v213_v11, %v153_v7  ;;  %v214_v20 = vmul.f32 %v208_v14, %v166_v13 }
 0x102   :  { %v221_v22 = vadd.f32 %v215_v15, %v155_v12  ;;  %v216_v23 = vmul.f32 %v210_v18, %v168_v17 }
 0x103   :  { %225 = vst.msk [vmem:[%s467_s3] sm:$0xff] %vm21_vm0, %v219_v19  ;;  %v284_v24 = vpack.c.bf16 %v219_v19, %v219_v19  ;;  %v220_v25 = vadd.f32 %v214_v20, %v154_v16 }
 0x104   :  { %227 = vst.msk [vmem:[%s467_s3 + $0x10] sm:$0xff] %vm21_vm0, %v221_v22  ;;  %v286_v26 = vpack.c.bf16 %v221_v22, %v221_v22  ;;  %v222_v27 = vadd.f32 %v216_v23, %v156_v21 }
 0x105   :  { %v331_v28 = vpop.eup %330  ;;  %256 = vst.msk [vmem:[%s468_s4] sm:$0xf] %vm255_vm2, %v284_v24  ;;  %v285_v29 = vpack.c.bf16 %v220_v25, %v220_v25 }
 0x106   :  { %226 = vst.msk [vmem:[%s467_s3 + $0x8] sm:$0xff] %vm21_vm0, %v220_v25  ;;  %228 = vst.msk [vmem:[%s467_s3 + $0x18] sm:$0xff] %vm21_vm0, %v222_v27  ;;  %v287_v30 = vpack.c.bf16 %v222_v27, %v222_v27  ;;  %v211_v32 = vadd.f32 1.0, %v331_v28  ;;  %v333_v34 = vpop.eup %332 }
 0x107   :  { %258 = vst.msk [vmem:[%s468_s4 + $0x8] sm:$0xf] %vm255_vm2, %v286_v26  ;;  %257 = vst.msk [vmem:[%s468_s4 + $0x4] sm:$0xf] %vm255_vm2, %v285_v29  ;;  %v212_v37 = vadd.f32 1.0, %v333_v34 }
 0x108   :  { %259 = vst.msk [vmem:[%s468_s4 + $0xc] sm:$0xf] %vm255_vm2, %v287_v30  ;;  %v217_v35 = vmul.f32 %v211_v32, %v169_v31 }
 0x109   :  { %v218_v40 = vmul.f32 %v212_v37, %v170_v36 }
 0x10a   :  { %v223_v38 = vadd.f32 %v217_v35, %v157_v33 }
 0x10b   :  { %v224_v42 = vadd.f32 %v218_v40, %v158_v39 }
 0x10c   :  { %229 = vst.msk [vmem:[%s467_s3 + $0x20] sm:$0xff] %vm21_vm0, %v223_v38  ;;  %v288_v41 = vpack.c.bf16 %v223_v38, %v223_v38 }
 0x10d   :  { %230 = vst.msk [vmem:[%s467_s3 + $0x28] sm:$0xff] %vm21_vm0, %v224_v42  ;;  %v289_v43 = vpack.c.bf16 %v224_v42, %v224_v42 }
 0x10e   :  { %260 = vst.msk [vmem:[%s468_s4 + $0x10] sm:$0xf] %vm255_vm2, %v288_v41 }
 0x10f   :  { %261 = vst.msk [vmem:[%s468_s4 + $0x14] sm:$0xf] %vm255_vm2, %v289_v43 }

// kernel: step.2
= control target key start
LH: loop header
LB: loop body
LE: loop exit
PB: predicated region body
PF: predicated region fallthrough
CT: control target
= control target key end

     0   :  { %vm35_vm0 = vcmask 261120   ;;  %v413_v3 = vmov 0.0   ;;  %s564_s0 = inlined_call_operand.vmem [shape: bf16[32,32], index: 0, kind: input, shape index: {}]   ;;  %s565_s1 = inlined_call_operand.vmem [shape: f32[32,32], index: 1, kind: input, shape index: {}]   ;;  %s566_s2 = inlined_call_operand.vmem [shape: bf16[32,32], index: 2, kind: input, shape index: {}]   ;;  %s567_s3 = inlined_call_operand.vmem [shape: bf16[32,32], index: 3, kind: input, shape index: {}]   ;;  %s568_s4 = inlined_call_operand.vmem [shape: f32[32,32], index: 4, kind: output, shape index: {0}]   ;;  %s569_s5 = inlined_call_operand.vmem [shape: bf16[32,32], index: 5, kind: output, shape index: {1}]   ;;  %s570_s6 = inlined_call_operand.hbm [shape: bf16[32,32], index: 6, kind: output, shape index: {2}]   ;;  %s571_s7 = inlined_call_operand.vmem [shape: f32[1,8,128], index: 7, kind: output, shape index: {3}]   ;;  %s572_s8 = inlined_call_operand.vmem [shape: f32[1,8,128], index: 8, kind: output, shape index: {4}]  }
   0x1   :  { %v377_v0 = vld [vmem:[%s567_s3] sm:$0xff]   ;;  %v378_v1 = vld [vmem:[%s567_s3 + $0x8] sm:$0xff]   ;;  %38 = vst.msk [vmem:[#allocation2 + $0x10] sm:$0xff] %vm35_vm0, %v413_v3  ;;  %36 = vst.msk [vmem:[#allocation2] sm:$0xff] %vm35_vm0, %v413_v3 }
   0x2   :  { %361 = vmatprep.subr.bf16.mxu0 %v377_v0  ;;  %v379_v2 = vld [vmem:[%s564_s0] sm:$0xff]   ;;  %37 = vst.msk [vmem:[#allocation2 + $0x8] sm:$0xff] %vm35_vm0, %v413_v3  ;;  %39 = vst.msk [vmem:[#allocation2 + $0x18] sm:$0xff] %vm35_vm0, %v413_v3 }
   0x3   :  { %362 = vmatpush3.bf16.msra.mxu0 %v377_v0  ;;  %365 = vmatprep.mubr.msk.bf16.mxu0 %vm35_vm0, %v379_v2 }
   0x4   :  { %363 = vmatprep.subr.bf16.mxu0 %v378_v1 }
   0x5   :  { %14 = vsyncpa [#allocation4], 0  ;;  %v380_v4 = vld [vmem:[%s564_s0 + $0x8] sm:$0xff]   ;;  %v349_v41 = vld [vmem:[%s566_s2] sm:$0xff]   ;;  %vm209_vm1 = vcmask 257024  }
   0x6   :  { %v350_v42 = vunpack.c.l.bf16 %v349_v41  ;;  %v356_v43 = vld [vmem:[%s566_s2 + $0x8] sm:$0xff]   ;;  %v351_v44 = vunpack.c.h.bf16 %v349_v41  ;;  %v183_v56 = vld [vmem:[%s565_s1 + $0x10] sm:$0xff]  ;;  %v181_v62 = vld [vmem:[%s565_s1] sm:$0xff] }
   0x7   :  { %364 = vmatpush3.bf16.msra.mxu0 %v378_v1  ;;  %v354_v47 = vunpack.c.l.bf16 %v356_v43  ;;  %v355_v52 = vunpack.c.h.bf16 %v356_v43  ;;  %v184_v3 = vld [vmem:[%s565_s1 + $0x18] sm:$0xff] }
   0x8   :  { %v42_v5 = vld [vmem:[#allocation2 + $0x10] sm:$0xff]  ;;  %v40_v6 = vld [vmem:[#allocation2] sm:$0xff]  ;;  %v271_v45 = vand.u32 2147483647, %v350_v42  ;;  %v272_v48 = vand.u32 2147483647, %v351_v44 }
   0x9   :  { %v43_v8 = vld [vmem:[#allocation2 + $0x18] sm:$0xff]  ;;  %v41_v11 = vld [vmem:[#allocation2 + $0x8] sm:$0xff]  ;;  %v273_v57 = vand.u32 2147483647, %v354_v47 }
   0xa   :  { %366 = vmatmul.mubr.msk.bf16.vlgmr.msra.gmra.mrb[0].mxu0 %vm35_vm0, %v380_v4  ;;  %v275_v63 = vsel %vm35_vm0, %v271_v45, 0.0  ;;  %v276_v4 = vsel %vm35_vm0, %v272_v48, 0.0 }
  0xdd   :  { %v367_v7 = vpop.f32.mrb[0].mxu0 }
  0xde   :  { %v132_v9 = vadd.f32 %v367_v7, %v42_v5  ;;  %v115_v10 = vpop.f32.mrb[1].mxu0 }
  0xdf   :  { %v130_v12 = vadd.f32 %v115_v10, %v40_v6  ;;  %v368_v13 = vpop.f32.mrb[2].mxu0  ;;  %v182_v6 = vld [vmem:[%s565_s1 + $0x8] sm:$0xff] }
  0xe0   :  { %136 = vst.msk [vmem:[#allocation2 + $0x10] sm:$0xff] %vm35_vm0, %v132_v9  ;;  %v133_v14 = vadd.f32 %v368_v13, %v43_v8  ;;  %v118_v15 = vpop.f32.mrb[3].mxu0 }
  0xe1   :  { %134 = vst.msk [vmem:[#allocation2] sm:$0xff] %vm35_vm0, %v130_v12  ;;  %v131_v16 = vadd.f32 %v118_v15, %v41_v11 }
  0xe2   :  { %137 = vst.msk [vmem:[#allocation2 + $0x18] sm:$0xff] %vm35_vm0, %v133_v14 }
  0xe3   :  { %135 = vst.msk [vmem:[#allocation2 + $0x8] sm:$0xff] %vm35_vm0, %v131_v16 }
  0xe7   :  { %v143_v17 = vld [vmem:[#allocation2 + $0x10] sm:$0xff] }
  0xe8   :  { %v141_v18 = vld [vmem:[#allocation2] sm:$0xff]  ;;  %v151_v19 = vmul.f32 0.044715, %v143_v17  ;;  %v147_v50 = vmul.f32 0.5, %v143_v17 }
  0xe9   :  { %v144_v20 = vld [vmem:[#allocation2 + $0x18] sm:$0xff]  ;;  %v149_v21 = vmul.f32 0.044715, %v141_v18  ;;  %v145_v54 = vmul.f32 0.5, %v141_v18 }
  0xea   :  { %v142_v22 = vld [vmem:[#allocation2 + $0x8] sm:$0xff]  ;;  %v152_v23 = vmul.f32 0.044715, %v144_v20  ;;  %v155_v24 = vmul.f32 %v151_v19, %v143_v17  ;;  %v148_v59 = vmul.f32 0.5, %v144_v20 }
  0xeb   :  { %v150_v25 = vmul.f32 0.044715, %v142_v22  ;;  %v153_v26 = vmul.f32 %v149_v21, %v141_v18  ;;  %v146_v0 = vmul.f32 0.5, %v142_v22 }
  0xec   :  { %v156_v27 = vmul.f32 %v152_v23, %v144_v20  ;;  %v159_v28 = vmul.f32 %v155_v24, %v143_v17 }
  0xed   :  { %v154_v29 = vmul.f32 %v150_v25, %v142_v22  ;;  %v157_v30 = vmul.f32 %v153_v26, %v141_v18 }
  0xee   :  { %v160_v31 = vmul.f32 %v156_v27, %v144_v20  ;;  %v163_v32 = vadd.f32 %v159_v28, %v143_v17  ;;  %v274_v27 = vand.u32 2147483647, %v355_v52  ;;  %v277_v28 = vadd.f32 %v276_v4, %v275_v63 }
  0xef   :  { %v158_v33 = vmul.f32 %v154_v29, %v142_v22  ;;  %v161_v34 = vadd.f32 %v157_v30, %v141_v18 }
  0xf0   :  { %v164_v35 = vadd.f32 %v160_v31, %v144_v20  ;;  %v167_v36 = vmul.f32 0.7978846, %v163_v32  ;;  %v278_v32 = vsel %vm35_vm0, %v273_v57, 0.0 }
  0xf1   :  { %v162_v37 = vadd.f32 %v158_v33, %v142_v22  ;;  %v165_v38 = vmul.f32 0.7978846, %v161_v34 }
  0xf2   :  { %v168_v39 = vmul.f32 0.7978846, %v164_v35  ;;  %381 = vtanh.f32 %v167_v36  ;;  %v279_v36 = vadd.f32 %v278_v32, %v277_v28 }
  0xf3   :  { %v166_v40 = vmul.f32 0.7978846, %v162_v37  ;;  %383 = vtanh.f32 %v165_v38  ;;  %v280_v38 = vsel %vm35_vm0, %v274_v27, 0.0 }
  0xf4   :  { %385 = vtanh.f32 %v168_v39 }
  0xf5   :  { %387 = vtanh.f32 %v166_v40  ;;  %v281_v40 = vadd.f32 %v280_v38, %v279_v36 }
  0xfc   :  { %v382_v46 = vpop.eup %381 }
  0xfd   :  { %v384_v49 = vpop.eup %383  ;;  %v175_v51 = vadd.f32 1.0, %v382_v46 }
  0xfe   :  { %v386_v53 = vpop.eup %385  ;;  %v173_v55 = vadd.f32 1.0, %v384_v49 }
  0xff   :  { %v388_v58 = vpop.eup %387  ;;  %v176_v60 = vadd.f32 1.0, %v386_v53  ;;  %v179_v61 = vmul.f32 %v175_v51, %v147_v50 }
 0x100   :  { %v174_v1 = vadd.f32 1.0, %v388_v58  ;;  %v177_v2 = vmul.f32 %v173_v55, %v145_v54 }
 0x101   :  { %v180_v5 = vmul.f32 %v176_v60, %v148_v59  ;;  %v187_v7 = vadd.f32 %v183_v56, %v179_v61  ;;  %v346_v8 = vpack.c.bf16 %v179_v61, %v179_v61  ;;  %v245_v9 = vsub.f32 %v354_v47, %v179_v61 }
 0x102   :  { %v178_v10 = vmul.f32 %v174_v1, %v146_v0  ;;  %v243_v11 = vsub.f32 %v350_v42, %v177_v2  ;;  %v185_v12 = vadd.f32 %v181_v62, %v177_v2  ;;  %v344_v13 = vpack.c.bf16 %v177_v2, %v177_v2 }
 0x103   :  { %v188_v14 = vadd.f32 %v184_v3, %v180_v5  ;;  %191 = vst.msk [vmem:[%s568_s4 + $0x10] sm:$0xff] %vm35_vm0, %v187_v7  ;;  %v342_v15 = vpack.c.bf16 %v187_v7, %v187_v7  ;;  %v347_v16 = vpack.c.bf16 %v180_v5, %v180_v5  ;;  %v246_v17 = vsub.f32 %v355_v52, %v180_v5 }
 0x104   :  { %232 = vst.msk [vmem:[#allocation3 + $0x8] sm:$0xf] %vm209_vm1, %v346_v8  ;;  %v186_v18 = vadd.f32 %v182_v6, %v178_v10  ;;  %v345_v19 = vpack.c.bf16 %v178_v10, %v178_v10  ;;  %v244_v20 = vsub.f32 %v351_v44, %v178_v10  ;;  %v247_v21 = vand.u32 2147483647, %v243_v11  ;;  %230 = vst.msk [vmem:[#allocation3] sm:$0xf] %vm209_vm1, %v344_v13 }
 0x105   :  { %189 = vst.msk [vmem:[%s568_s4] sm:$0xff] %vm35_vm0, %v185_v12  ;;  %192 = vst.msk [vmem:[%s568_s4 + $0x18] sm:$0xff] %vm35_vm0, %v188_v14  ;;  %v343_v22 = vpack.c.bf16 %v188_v14, %v188_v14  ;;  %v340_v23 = vpack.c.bf16 %v185_v12, %v185_v12  ;;  %v249_v26 = vand.u32 2147483647, %v245_v9  ;;  %v250_v29 = vand.u32 2147483647, %v246_v17 }
 0x106   :  { %212 = vst.msk [vmem:[%s569_s5 + $0x8] sm:$0xf] %vm209_vm1, %v342_v15  ;;  %233 = vst.msk [vmem:[#allocation3 + $0xc] sm:$0xf] %vm209_vm1, %v347_v16  ;;  %v341_v24 = vpack.c.bf16 %v186_v18, %v186_v18  ;;  %v248_v25 = vand.u32 2147483647, %v244_v20 }
 0x107   :  { %190 = vst.msk [vmem:[%s568_s4 + $0x8] sm:$0xff] %vm35_vm0, %v186_v18  ;;  %v251_v30 = vsel %vm35_vm0, %v247_v21, 0.0  ;;  %v254_v34 = vsel %vm35_vm0, %v249_v26, 0.0  ;;  %v256_v37 = vsel %vm35_vm0, %v250_v29, 0.0 }
 0x108   :  { %231 = vst.msk [vmem:[#allocation3 + $0x4] sm:$0xf] %vm209_vm1, %v345_v19  ;;  %213 = vst.msk [vmem:[%s569_s5 + $0xc] sm:$0xf] %vm209_vm1, %v343_v22  ;;  %v252_v31 = vsel %vm35_vm0, %v248_v25, 0.0 }
 0x109   :  { %210 = vst.msk [vmem:[%s569_s5] sm:$0xf] %vm209_vm1, %v340_v23  ;;  %211 = vst.msk [vmem:[%s569_s5 + $0x4] sm:$0xf] %vm209_vm1, %v341_v24  ;;  %v253_v33 = vadd.f32 %v252_v31, %v251_v30  ;;  %s414_s5 = smov [#allocation3]  }
 0x10a   :  { %s303_s12 = sshll.u32 %s414_s5, 4  ;;  %s304_s12 = int_to_ptr.vmem [resolvable:$true] %s303_s12 }
 0x10b   :  { %v255_v35 = vadd.f32 %v254_v34, %v253_v33  ;;  %s389_s13 = scalar_lea.vmem %s304_s12, 256  ;;  %p394_p1 = scmp.lt.s32.totalorder %s304_s12, %s304_s12 }
 0x10c   :  { %p390_p0 = scmp.ne.s32.totalorder %s304_s12, %s389_s13  ;;  %p395_p2 = scmp.lt.s32.totalorder %s389_s13, %s389_s13 }
 0x10d   :  { %v257_v39 = vadd.f32 %v256_v37, %v255_v35 }
 0x10e   :  { %p396_p3 = por %p395_p2, %p394_p1 }
 0x10f   :  { %258 = vadd.xlane.f32.xlu0 %v257_v39 }
 0x110   :  { %p397_p4 = pnand %p396_p3, %p390_p0 }
 0x113   :  { %282 = vadd.xlane.f32.xlu0 %v281_v40 }
 0x114   :  { %400 = shalt.err (!%p397_p4)
}
 0x115   :  { %s401_s16 = scalar_lea.hbm %s570_s6, 256 }
 0x116   :  { %p402_p5 = scmp.ne.s32.totalorder %s570_s6, %s401_s16  ;;  %p405_p6 = scmp.lt.u32.totalorder %s401_s16, %s570_s6 }
 0x118   :  { %p407_p7 = pnand %p405_p6, %p402_p5 }
 0x11a   :  { %410 = shalt.err (!%p407_p7)
}
 0x11b   :  { %s415_s20 = smov 64   ;;  %s416_s21 = smov 4  }
 0x11c   :  { %309 = dma.vmem_to_hbm [thread:$0]  %s304_s12, 256, %s570_s6, [#allocation4], %s415_s20, %s415_s20, %s416_s21  }
 0x19c   :  { %v259_v41 = vpop.xlane.xlu0 %258 }
 0x19d   :  { %v260_v42 = vrot.slane %v259_v41, 4 }
 0x19f   :  { %v261_v43 = vadd.f32 %v260_v42, %v259_v41 }
 0x1a0   :  { %v283_v44 = vpop.xlane.xlu0 %282 }
 0x1a1   :  { %v262_v45 = vrot.slane %v261_v43, 2  ;;  %v284_v46 = vrot.slane %v283_v44, 4 }
 0x1a3   :  { %v285_v47 = vadd.f32 %v284_v46, %v283_v44  ;;  %v263_v48 = vadd.f32 %v262_v45, %v261_v43 }
 0x1a5   :  { %v286_v49 = vrot.slane %v285_v47, 2  ;;  %v264_v50 = vrot.slane %v263_v48, 1 }
 0x1a7   :  { %v287_v51 = vadd.f32 %v286_v49, %v285_v47  ;;  %v265_v52 = vadd.f32 %v264_v50, %v263_v48 }
 0x1a9   :  { %369 = vpush %v265_v52  ;;  %v288_v53 = vrot.slane %v287_v51, 1 }
 0x1ab   :  { %v289_v54 = vadd.f32 %v288_v53, %v287_v51 }
 0x1ad   :  { %371 = vpush %v289_v54 }
 0x1da   :  { %s370_s1 = spop %369 }
 0x1db   :  { %v267_v55 = vstv %s370_s1 }
 0x1dc   :  { %269 = vst [vmem:[%s571_s7] sm:$0xff] %v267_v55 }
 0x1de   :  { %s372_s25 = spop %371 }
 0x1df   :  { %v291_v56 = vstv %s372_s25 }
 0x1e0   :  { %293 = vst [vmem:[%s572_s8] sm:$0xff] %v291_v56 }
 0x1e1   :  { %411 = dma.done.wait [#allocation4], 256  }
 0x1e2   :  { %412 = vsyncadd [#allocation4], 4294967040 }
 0x1e3   :  { %325 = vsyncpa [#allocation4], 1 }

// kernel: branch_1_fun.3
= control target key start
LH: loop header
LB: loop body
LE: loop exit
PB: predicated region body
PF: predicated region fallthrough
CT: control target
= control target key end

     0   :  { %7 = vsyncpa [#allocation3], 0  ;;  %s159_s0 = inlined_call_operand.vmem [shape: f32[16,32], index: 0, kind: input, shape index: {}]   ;;  %s160_s1 = inlined_call_operand.hbm [shape: f32[16,32], index: 1, kind: input, shape index: {}]   ;;  %s161_s2 = inlined_call_operand.hbm [shape: f32[16,32], index: 2, kind: output, shape index: {}]  }
   0x1   :  { %8 = vsyncpa [#allocation4], 0  ;;  %s104_s9 = smov [#allocation2]   ;;  %s56_s13 = scalar_lea.hbm %s160_s1, 256 }
   0x2   :  { %s16_s10 = sshll.u32 %s104_s9, 4  ;;  %p57_p0 = scmp.ne.s32.totalorder %s160_s1, %s56_s13  ;;  %s17_s10 = int_to_ptr.vmem [resolvable:$true] %s16_s10 }
   0x3   :  { %p60_p1 = scmp.lt.u32.totalorder %s56_s13, %s160_s1 }
   0x5   :  { %p62_p2 = pnand %p60_p1, %p57_p0 }
   0x7   :  { %65 = shalt.err (!%p62_p2)
}
   0x8   :  { %s66_s18 = scalar_lea.vmem %s17_s10, 256  ;;  %p71_p4 = scmp.lt.s32.totalorder %s17_s10, %s17_s10 }
   0x9   :  { %p67_p3 = scmp.ne.s32.totalorder %s17_s10, %s66_s18  ;;  %p72_p5 = scmp.lt.s32.totalorder %s66_s18, %s66_s18 }
   0xb   :  { %p73_p6 = por %p72_p5, %p71_p4 }
   0xd   :  { %p74_p7 = pnand %p73_p6, %p67_p3 }
   0xf   :  { %77 = shalt.err (!%p74_p7)
}
  0x10   :  { %s105_s19 = smov 128   ;;  %s106_s20 = smov 8  }
  0x11   :  { %22 = dma.hbm_to_vmem [thread:$0]  %s160_s1, 256, %s17_s10, [#allocation3], %s105_s19, %s105_s19, %s106_s20  }
  0x12   :  { %100 = dma.done.wait [#allocation3], 256  }
  0x13   :  { %101 = vsyncadd [#allocation3], 4294967040  ;;  %s107_s23 = smov [#allocation5]   ;;  %v26_v0 = vld [vmem:[%s159_s0] sm:$0xff]  ;;  %vm32_vm0 = vcmask 261120   ;;  %v27_v2 = vld [vmem:[%s159_s0 + $0x8] sm:$0xff] }
  0x14   :  { %s40_s24 = sshll.u32 %s107_s23, 4  ;;  %v28_v1 = vld [vmem:[#allocation2] sm:$0xff]  ;;  %v29_v4 = vld [vmem:[#allocation2 + $0x8] sm:$0xff]  ;;  %s41_s24 = int_to_ptr.vmem [resolvable:$true] %s40_s24 }
  0x15   :  { %v30_v3 = vadd.f32 %v28_v1, %v26_v0  ;;  %v31_v5 = vadd.f32 %v29_v4, %v27_v2  ;;  %s78_s1 = scalar_lea.vmem %s41_s24, 256  ;;  %p83_p9 = scmp.lt.s32.totalorder %s41_s24, %s41_s24 }
  0x16   :  { %p79_p8 = scmp.ne.s32.totalorder %s41_s24, %s78_s1  ;;  %p84_p10 = scmp.lt.s32.totalorder %s78_s1, %s78_s1 }
  0x17   :  { %33 = vst.msk [vmem:[#allocation5] sm:$0xff] %vm32_vm0, %v30_v3  ;;  %34 = vst.msk [vmem:[#allocation5 + $0x8] sm:$0xff] %vm32_vm0, %v31_v5 }
  0x18   :  { %p85_p11 = por %p84_p10, %p83_p9 }
  0x1a   :  { %p86_p12 = pnand %p85_p11, %p79_p8 }
  0x1c   :  { %89 = shalt.err (!%p86_p12)
}
  0x1d   :  { %s90_s3 = scalar_lea.hbm %s161_s2, 256 }
  0x1e   :  { %p91_p13 = scmp.ne.s32.totalorder %s161_s2, %s90_s3  ;;  %p94_p0 = scmp.lt.u32.totalorder %s90_s3, %s161_s2 }
  0x20   :  { %p96_p1 = pnand %p94_p0, %p91_p13 }
  0x22   :  { %99 = shalt.err (!%p96_p1)
}
  0x23   :  { %46 = dma.vmem_to_hbm [thread:$0]  %s41_s24, 256, %s161_s2, [#allocation4], %s105_s19, %s105_s19, %s106_s20  }
  0x24   :  { %102 = dma.done.wait [#allocation4], 256  }
  0x25   :  { %103 = vsyncadd [#allocation4], 4294967040 }
  0x26   :  { %50 = vsyncpa [#allocation3], 1 }
  0x27   :  { %51 = vsyncpa [#allocation4], 1 }

// kernel: branch_0_fun.11
= control target key start
LH: loop header
LB: loop body
LE: loop exit
PB: predicated region body
PF: predicated region fallthrough
CT: control target
= control target key end

     0   :  { %vm24_vm0 = vcmask 261120   ;;  %v312_v0 = vmov 0.0   ;;  %vm313_vm1 = vmmov 0   ;;  %s472_s3 = inlined_call_operand.vmem [shape: bf16[32,32], index: 3, kind: input, shape index: {}]   ;;  %s473_s0 = inlined_call_operand.vmem [shape: bf16[48,32], index: 0, kind: input, shape index: {}]   ;;  %s474_s1 = inlined_call_operand.vmem [shape: f32[48,32], index: 1, kind: input, shape index: {}]   ;;  %s475_s2 = inlined_call_operand.vmem [shape: f32[48,32], index: 2, kind: input, shape index: {}]   ;;  %s476_s4 = inlined_call_operand.vmem [shape: f32[48,32], index: 4, kind: output, shape index: {0}]   ;;  %s477_s5 = inlined_call_operand.vmem [shape: f32[48,32], index: 5, kind: output, shape index: {1}]  }
   0x1   :  { %273 = vmatprep.subr.bf16.mxu0 %v312_v0  ;;  %289 = vmatprep.subr.bf16.mxu1 %v312_v0  ;;  %v295_v1 = vld [vmem:[%s472_s3] sm:$0xff]   ;;  %25 = vst.msk [vmem:[#allocation2] sm:$0xff] %vm24_vm0, %v312_v0  ;;  %26 = vst.msk [vmem:[#allocation2 + $0x8] sm:$0xff] %vm24_vm0, %v312_v0  ;;  %v296_v2 = vld [vmem:[%s472_s3 + $0x8] sm:$0xff]  }
   0x2   :  { %27 = vst.msk [vmem:[#allocation2 + $0x10] sm:$0xff] %vm24_vm0, %v312_v0  ;;  %28 = vst.msk [vmem:[#allocation2 + $0x18] sm:$0xff] %vm24_vm0, %v312_v0  ;;  %277 = vmatprep.mubr.msk.bf16.mxu0 %vm313_vm1, %v312_v0  ;;  %281 = vmatprep.mubr.msk.bf16.mxu1 %vm313_vm1, %v312_v0  ;;  %v297_v3 = vld [vmem:[%s473_s0] sm:$0xff]   ;;  %v298_v4 = vld [vmem:[%s473_s0 + $0x8] sm:$0xff]  }
   0x3   :  { %29 = vst.msk [vmem:[#allocation2 + $0x20] sm:$0xff] %vm24_vm0, %v312_v0  ;;  %30 = vst.msk [vmem:[#allocation2 + $0x28] sm:$0xff] %vm24_vm0, %v312_v0  ;;  %274 = vmatpush3.bf16.msra.mxu0 %v295_v1  ;;  %291 = vmatpush3.bf16.msra.mxu1 %v295_v1  ;;  %v299_v5 = vld [vmem:[%s473_s0 + $0x10] sm:$0xff]  }
   0x4   :  { %275 = vmatprep.subr.bf16.mxu0 %v312_v0  ;;  %290 = vmatprep.subr.bf16.mxu1 %v312_v0 }
   0x7   :  { %276 = vmatpush3.bf16.msra.mxu0 %v296_v2  ;;  %292 = vmatpush3.bf16.msra.mxu1 %v296_v2 }
   0x8   :  { %v31_v6 = vld [vmem:[#allocation2] sm:$0xff]  ;;  %v32_v10 = vld [vmem:[#allocation2 + $0x8] sm:$0xff] }
   0x9   :  { %v33_v7 = vld [vmem:[#allocation2 + $0x10] sm:$0xff]  ;;  %v34_v11 = vld [vmem:[#allocation2 + $0x18] sm:$0xff] }
   0xa   :  { %278 = vmatmul.mubr.msk.bf16.vlgmr.msra.gmra.mrb[0].mxu0 %vm24_vm0, %v297_v3  ;;  %282 = vmatmul.mubr.msk.bf16.vlgmr.msra.gmra.mrb[0].mxu1 %vm24_vm0, %v298_v4  ;;  %v35_v22 = vld [vmem:[#allocation2 + $0x20] sm:$0xff]  ;;  %v36_v26 = vld [vmem:[#allocation2 + $0x28] sm:$0xff] }
   0xb   :  { %285 = vmatprep.mubr.msk.bf16.mxu1 %vm313_vm1, %v312_v0 }
  0x12   :  { %286 = vmatmul.mubr.msk.bf16.gmra.mrb[4].mxu1 %vm24_vm0, %v299_v5 }
  0xdd   :  { %v118_v8 = vpop.f32.mrb[0].mxu0  ;;  %v126_v9 = vpop.f32.mrb[0].mxu1 }
  0xde   :  { %v141_v12 = vadd.f32 %v118_v8, %v31_v6  ;;  %v143_v13 = vadd.f32 %v126_v9, %v33_v7  ;;  %v279_v14 = vpop.f32.mrb[1].mxu0  ;;  %v283_v15 = vpop.f32.mrb[1].mxu1  ;;  %v156_v7 = vld [vmem:[%s474_s1] sm:$0xff] }
  0xdf   :  { %v121_v16 = vpop.f32.mrb[2].mxu0  ;;  %v129_v17 = vpop.f32.mrb[2].mxu1  ;;  %v234_v15 = vld [vmem:[%s475_s2] sm:$0xff] }
  0xe0   :  { %147 = vst.msk [vmem:[#allocation2] sm:$0xff] %vm24_vm0, %v141_v12  ;;  %149 = vst.msk [vmem:[#allocation2 + $0x10] sm:$0xff] %vm24_vm0, %v143_v13  ;;  %v142_v18 = vadd.f32 %v121_v16, %v32_v10  ;;  %v144_v19 = vadd.f32 %v129_v17, %v34_v11  ;;  %v284_v20 = vpop.f32.mrb[3].mxu1  ;;  %v280_v21 = vpop.f32.mrb[3].mxu0  ;;  %v158_v12 = vld [vmem:[%s474_s1 + $0x10] sm:$0xff]  ;;  %v157_v17 = vld [vmem:[%s474_s1 + $0x8] sm:$0xff] }
  0xe1   :  { %v236_v21 = vld [vmem:[%s475_s2 + $0x10] sm:$0xff] }
  0xe2   :  { %148 = vst.msk [vmem:[#allocation2 + $0x8] sm:$0xff] %vm24_vm0, %v142_v18  ;;  %150 = vst.msk [vmem:[#allocation2 + $0x18] sm:$0xff] %vm24_vm0, %v144_v19 }
  0xe5   :  { %v134_v23 = vpop.f32.mrb[4].mxu1 }
  0xe6   :  { %v145_v24 = vadd.f32 %v134_v23, %v35_v22  ;;  %v287_v25 = vpop.f32.mrb[5].mxu1  ;;  %v159_v23 = vld [vmem:[%s474_s1 + $0x18] sm:$0xff] }
  0xe7   :  { %v162_v27 = vld [vmem:[#allocation2] sm:$0xff]  ;;  %v164_v28 = vld [vmem:[#allocation2 + $0x10] sm:$0xff]  ;;  %v137_v29 = vpop.f32.mrb[6].mxu1  ;;  %v235_v25 = vld [vmem:[%s475_s2 + $0x8] sm:$0xff] }
  0xe8   :  { %v174_v30 = vmul.f32 0.044715, %v162_v27  ;;  %v176_v31 = vmul.f32 0.044715, %v164_v28  ;;  %151 = vst.msk [vmem:[#allocation2 + $0x20] sm:$0xff] %vm24_vm0, %v145_v24  ;;  %v146_v34 = vadd.f32 %v137_v29, %v36_v26  ;;  %v288_v35 = vpop.f32.mrb[7].mxu1 }
  0xe9   :  { %v163_v32 = vld [vmem:[#allocation2 + $0x8] sm:$0xff]  ;;  %v165_v33 = vld [vmem:[#allocation2 + $0x18] sm:$0xff]  ;;  %v168_v4 = vmul.f32 0.5, %v162_v27  ;;  %v170_v8 = vmul.f32 0.5, %v164_v28 }
  0xea   :  { %v180_v36 = vmul.f32 %v174_v30, %v162_v27  ;;  %v182_v37 = vmul.f32 %v176_v31, %v164_v28  ;;  %v175_v38 = vmul.f32 0.044715, %v163_v32  ;;  %v177_v39 = vmul.f32 0.044715, %v165_v33  ;;  %152 = vst.msk [vmem:[#allocation2 + $0x28] sm:$0xff] %vm24_vm0, %v146_v34  ;;  %v237_v29 = vld [vmem:[%s475_s2 + $0x18] sm:$0xff] }
  0xeb   :  { %v169_v13 = vmul.f32 0.5, %v163_v32  ;;  %v171_v18 = vmul.f32 0.5, %v165_v33 }
  0xec   :  { %v186_v40 = vmul.f32 %v180_v36, %v162_v27  ;;  %v188_v41 = vmul.f32 %v182_v37, %v164_v28  ;;  %v181_v42 = vmul.f32 %v175_v38, %v163_v32  ;;  %v183_v43 = vmul.f32 %v177_v39, %v165_v33  ;;  %v160_v37 = vld [vmem:[%s474_s1 + $0x20] sm:$0xff] }
  0xee   :  { %v192_v44 = vadd.f32 %v186_v40, %v162_v27  ;;  %v194_v45 = vadd.f32 %v188_v41, %v164_v28  ;;  %v187_v46 = vmul.f32 %v181_v42, %v163_v32  ;;  %v189_v47 = vmul.f32 %v183_v43, %v165_v33  ;;  %v238_v40 = vld [vmem:[%s475_s2 + $0x20] sm:$0xff] }
  0xef   :  { %v374_v48 = vld [vmem:[#allocation2 + $0x20] sm:$0xff] }
  0xf0   :  { %v198_v49 = vmul.f32 0.7978846, %v192_v44  ;;  %v200_v50 = vmul.f32 0.7978846, %v194_v45  ;;  %v193_v51 = vadd.f32 %v187_v46, %v163_v32  ;;  %v195_v52 = vadd.f32 %v189_v47, %v165_v33  ;;  %v161_v44 = vld [vmem:[%s474_s1 + $0x28] sm:$0xff] }
  0xf1   :  { %v178_v53 = vmul.f32 0.044715, %v374_v48  ;;  %v377_v55 = vld [vmem:[#allocation2 + $0x28] sm:$0xff]  ;;  %v172_v35 = vmul.f32 0.5, %v374_v48 }
  0xf2   :  { %300 = vtanh.f32 %v198_v49  ;;  %v199_v54 = vmul.f32 0.7978846, %v193_v51  ;;  %v201_v56 = vmul.f32 0.7978846, %v195_v52  ;;  %v179_v58 = vmul.f32 0.044715, %v377_v55 }
  0xf3   :  { %302 = vtanh.f32 %v200_v50  ;;  %v184_v57 = vmul.f32 %v178_v53, %v374_v48  ;;  %v173_v41 = vmul.f32 0.5, %v377_v55  ;;  %v239_v47 = vld [vmem:[%s475_s2 + $0x28] sm:$0xff] }
  0xf4   :  { %304 = vtanh.f32 %v199_v54  ;;  %v185_v60 = vmul.f32 %v179_v58, %v377_v55 }
  0xf5   :  { %306 = vtanh.f32 %v201_v56  ;;  %v190_v59 = vmul.f32 %v184_v57, %v374_v48 }
  0xf6   :  { %v191_v62 = vmul.f32 %v185_v60, %v377_v55 }
  0xf7   :  { %v196_v61 = vadd.f32 %v190_v59, %v374_v48 }
  0xf8   :  { %v197_v0 = vadd.f32 %v191_v62, %v377_v55 }
  0xf9   :  { %v202_v63 = vmul.f32 0.7978846, %v196_v61 }
  0xfa   :  { %v203_v2 = vmul.f32 0.7978846, %v197_v0 }
  0xfb   :  { %308 = vtanh.f32 %v202_v63 }
  0xfc   :  { %v301_v1 = vpop.eup %300  ;;  %310 = vtanh.f32 %v203_v2 }
  0xfd   :  { %v303_v3 = vpop.eup %302  ;;  %v210_v5 = vadd.f32 1.0, %v301_v1 }
  0xfe   :  { %v305_v6 = vpop.eup %304  ;;  %v212_v9 = vadd.f32 1.0, %v303_v3 }
  0xff   :  { %v307_v10 = vpop.eup %306  ;;  %v216_v11 = vmul.f32 %v210_v5, %v168_v4  ;;  %v211_v14 = vadd.f32 1.0, %v305_v6 }
 0x100   :  { %v218_v16 = vmul.f32 %v212_v9, %v170_v8  ;;  %v213_v19 = vadd.f32 1.0, %v307_v10 }
 0x101   :  { %v222_v20 = vadd.f32 %v216_v11, %v156_v7  ;;  %v217_v22 = vmul.f32 %v211_v14, %v169_v13 }
 0x102   :  { %v224_v24 = vadd.f32 %v218_v16, %v158_v12  ;;  %v219_v26 = vmul.f32 %v213_v19, %v171_v18 }
 0x103   :  { %228 = vst.msk [vmem:[%s476_s4] sm:$0xff] %vm24_vm0, %v222_v20  ;;  %v240_v27 = vsub.f32 %v222_v20, %v234_v15  ;;  %v223_v28 = vadd.f32 %v217_v22, %v157_v17 }
 0x104   :  { %230 = vst.msk [vmem:[%s476_s4 + $0x10] sm:$0xff] %vm24_vm0, %v224_v24  ;;  %v242_v30 = vsub.f32 %v224_v24, %v236_v21  ;;  %v225_v31 = vadd.f32 %v219_v26, %v159_v23 }
 0x105   :  { %v309_v32 = vpop.eup %308  ;;  %246 = vst.msk [vmem:[%s477_s5] sm:$0xff] %vm24_vm0, %v240_v27  ;;  %229 = vst.msk [vmem:[%s476_s4 + $0x8] sm:$0xff] %vm24_vm0, %v223_v28  ;;  %v241_v33 = vsub.f32 %v223_v28, %v235_v25 }
 0x106   :  { %248 = vst.msk [vmem:[%s477_s5 + $0x10] sm:$0xff] %vm24_vm0, %v242_v30  ;;  %231 = vst.msk [vmem:[%s476_s4 + $0x18] sm:$0xff] %vm24_vm0, %v225_v31  ;;  %v243_v34 = vsub.f32 %v225_v31, %v237_v29  ;;  %v214_v36 = vadd.f32 1.0, %v309_v32  ;;  %v311_v38 = vpop.eup %310 }
 0x107   :  { %247 = vst.msk [vmem:[%s477_s5 + $0x8] sm:$0xff] %vm24_vm0, %v241_v33  ;;  %v215_v42 = vadd.f32 1.0, %v311_v38 }
 0x108   :  { %249 = vst.msk [vmem:[%s477_s5 + $0x18] sm:$0xff] %vm24_vm0, %v243_v34  ;;  %v220_v39 = vmul.f32 %v214_v36, %v172_v35 }
 0x109   :  { %v221_v45 = vmul.f32 %v215_v42, %v173_v41 }
 0x10a   :  { %v226_v43 = vadd.f32 %v220_v39, %v160_v37 }
 0x10b   :  { %v227_v48 = vadd.f32 %v221_v45, %v161_v44 }
 0x10c   :  { %232 = vst.msk [vmem:[%s476_s4 + $0x20] sm:$0xff] %vm24_vm0, %v226_v43  ;;  %v244_v46 = vsub.f32 %v226_v43, %v238_v40 }
 0x10d   :  { %233 = vst.msk [vmem:[%s476_s4 + $0x28] sm:$0xff] %vm24_vm0, %v227_v48  ;;  %v245_v49 = vsub.f32 %v227_v48, %v239_v47 }
 0x10e   :  { %250 = vst.msk [vmem:[%s477_s5 + $0x20] sm:$0xff] %vm24_vm0, %v244_v46 }
 0x10f   :  { %251 = vst.msk [vmem:[%s477_s5 + $0x28] sm:$0xff] %vm24_vm0, %v245_v49 }

// kernel: branch_1_fun.2
= control target key start
LH: loop header
LB: loop body
LE: loop exit
PB: predicated region body
PF: predicated region fallthrough
CT: control target
= control target key end

     0   :  { %vm24_vm0 = vcmask 261120   ;;  %s72_s21 = smov [#allocation2]   ;;  %s130_s0 = inlined_call_operand.vmem [shape: f32[32,32], index: 0, kind: input, shape index: {}]   ;;  %s131_s1 = inlined_call_operand.vmem [shape: f32[32,32], index: 1, kind: input, shape index: {}]   ;;  %s132_s2 = inlined_call_operand.hbm [shape: f32[32,32], index: 2, kind: output, shape index: {}]  }
   0x1   :  { %v12_v0 = vld [vmem:[%s130_s0] sm:$0xff]  ;;  %v13_v2 = vld [vmem:[%s130_s0 + $0x8] sm:$0xff]  ;;  %v14_v5 = vld [vmem:[%s130_s0 + $0x10] sm:$0xff]  ;;  %s34_s22 = sshll.u32 %s72_s21, 4  ;;  %s35_s22 = int_to_ptr.vmem [resolvable:$true] %s34_s22 }
   0x2   :  { %v16_v1 = vld [vmem:[%s131_s1] sm:$0xff]  ;;  %v17_v4 = vld [vmem:[%s131_s1 + $0x8] sm:$0xff]  ;;  %v18_v6 = vld [vmem:[%s131_s1 + $0x10] sm:$0xff] }
   0x3   :  { %v20_v3 = vadd.f32 %v16_v1, %v12_v0  ;;  %v21_v7 = vadd.f32 %v17_v4, %v13_v2  ;;  %v22_v8 = vadd.f32 %v18_v6, %v14_v5  ;;  %v15_v9 = vld [vmem:[%s130_s0 + $0x18] sm:$0xff] }
   0x4   :  { %v19_v10 = vld [vmem:[%s131_s1 + $0x18] sm:$0xff] }
   0x5   :  { %7 = vsyncpa [#allocation3], 0  ;;  %25 = vst.msk [vmem:[#allocation2] sm:$0xff] %vm24_vm0, %v20_v3  ;;  %v23_v11 = vadd.f32 %v19_v10, %v15_v9  ;;  %s48_s27 = scalar_lea.vmem %s35_s22, 512  ;;  %p53_p1 = scmp.lt.s32.totalorder %s35_s22, %s35_s22 }
   0x6   :  { %26 = vst.msk [vmem:[#allocation2 + $0x8] sm:$0xff] %vm24_vm0, %v21_v7  ;;  %27 = vst.msk [vmem:[#allocation2 + $0x10] sm:$0xff] %vm24_vm0, %v22_v8  ;;  %p49_p0 = scmp.ne.s32.totalorder %s35_s22, %s48_s27  ;;  %p54_p2 = scmp.lt.s32.totalorder %s48_s27, %s48_s27 }
   0x7   :  { %28 = vst.msk [vmem:[#allocation2 + $0x18] sm:$0xff] %vm24_vm0, %v23_v11 }
   0x8   :  { %p55_p3 = por %p54_p2, %p53_p1 }
   0xa   :  { %p56_p4 = pnand %p55_p3, %p49_p0 }
   0xc   :  { %59 = shalt.err (!%p56_p4)
}
   0xd   :  { %s60_s28 = scalar_lea.hbm %s132_s2, 512 }
   0xe   :  { %p61_p5 = scmp.ne.s32.totalorder %s132_s2, %s60_s28  ;;  %p64_p6 = scmp.lt.u32.totalorder %s60_s28, %s132_s2 }
  0x10   :  { %p66_p7 = pnand %p64_p6, %p61_p5 }
  0x12   :  { %69 = shalt.err (!%p66_p7)
}
  0x13   :  { %s73_s5 = smov 128   ;;  %s74_s6 = smov 8  }
  0x14   :  { %40 = dma.vmem_to_hbm [thread:$0]  %s35_s22, 512, %s132_s2, [#allocation3], %s73_s5, %s73_s5, %s74_s6  }
  0x15   :  { %70 = dma.done.wait [#allocation3], 512  }
  0x16   :  { %71 = vsyncadd [#allocation3], 4294966784 }
  0x17   :  { %44 = vsyncpa [#allocation3], 1 }

</bundles_post_ra>
